<compile_context>
chip_gen: v7x
topology: tpu7x:2x2x1
jax: 0.10.0
libtpu: 0.0.40
codegen_flags: <defaults>
</compile_context>

<pallas_src>
import functools

import jax
import jax.numpy as jnp
from jax import lax
from jax.experimental import pallas as pl
from jax.experimental.pallas import tpu as pltpu


def _motion_kernel(x_ref, wih_ref, p_ref, out_ref, *,
                   seq_len, block_batch, H, out,
                   r_bias, r_bcls, r_whh, r_wcls):
    BB = block_batch

    # ---- one-time parameter slices from the packed slab (off the loop) -----
    bias = p_ref[r_bias:r_bias + 1, 0:8 * H]                 # (1, 8H)
    bcls = p_ref[r_bcls:r_bcls + 1, 0:out]                   # (1, out)
    whh_i = p_ref[r_whh:r_whh + H, 0 * H:1 * H]              # (H, H) each
    whh_f = p_ref[r_whh:r_whh + H, 1 * H:2 * H]
    whh_o = p_ref[r_whh:r_whh + H, 2 * H:3 * H]
    whh_g = p_ref[r_whh:r_whh + H, 3 * H:4 * H]
    wcls_f = p_ref[r_wcls:r_wcls + H, 0:out]                 # (H, out)
    wcls_b = p_ref[r_wcls:r_wcls + H, out:2 * out]           # (H, out)

    # ---- hoisted input projection: all timesteps, both directions ----------
    xb = x_ref[0]                                            # (T*BB, in)
    gx = (jnp.dot(xb, wih_ref[...], preferred_element_type=jnp.float32)
          + bias)                                            # (T*BB, 8H)

    # Pre-separate forward gate chunks ONCE (gate order [i, f, o, g]); the
    # recurrence then only takes aligned sublane slabs, no lane selects.
    gxi = gx[:, 0 * H:1 * H]
    gxf = gx[:, 1 * H:2 * H]
    gxo = gx[:, 2 * H:3 * H]
    gxg = gx[:, 3 * H:4 * H]

    # ---- backward direction: one cell step on x[T-1] from zero state -------
    # (zero init => W_hh_b matmul and f*c0 drop out).  Issued before the
    # forward loop (independent) so its latency hides under the recurrence.
    last = (seq_len - 1) * BB
    b_i = jax.nn.sigmoid(gx[last:, 4 * H:5 * H])
    b_o = jax.nn.sigmoid(gx[last:, 6 * H:7 * H])
    b_g = jnp.tanh(gx[last:, 7 * H:8 * H])
    c_b = b_i * b_g
    h_b = b_o * jnp.tanh(c_b)
    out_b = (jnp.dot(h_b, wcls_b, preferred_element_type=jnp.float32)
             + bcls)                                         # (BB, out)

    # ---- forward recurrence -------------------------------------------------
    if seq_len <= 16:
        # Fully unrolled: LLO scheduler can interleave MXU/EUP/VPU across steps.
        h = None
        c = None
        for t in range(seq_len):
            base = t * BB
            if t == 0:
                # h0 = c0 = 0: skip the four hh matmuls and the f-gate entirely.
                i = jax.nn.sigmoid(gxi[:BB])
                o = jax.nn.sigmoid(gxo[:BB])
                g = jnp.tanh(gxg[:BB])
                c = i * g
            else:
                zi = gxi[base:base + BB] + jnp.dot(
                    h, whh_i, preferred_element_type=jnp.float32)
                zf = gxf[base:base + BB] + jnp.dot(
                    h, whh_f, preferred_element_type=jnp.float32)
                zo = gxo[base:base + BB] + jnp.dot(
                    h, whh_o, preferred_element_type=jnp.float32)
                zg = gxg[base:base + BB] + jnp.dot(
                    h, whh_g, preferred_element_type=jnp.float32)
                i = jax.nn.sigmoid(zi)
                f = jax.nn.sigmoid(zf)
                o = jax.nn.sigmoid(zo)
                g = jnp.tanh(zg)
                c = f * c + i * g
            h = o * jnp.tanh(c)
    else:
        # Long sequences: bounded live ranges, modest unroll for scheduler view.
        def step(t, carry):
            h, c = carry
            base = t * BB

            def sl(a):
                return lax.dynamic_slice_in_dim(a, base, BB, axis=0)

            zi = sl(gxi) + jnp.dot(h, whh_i, preferred_element_type=jnp.float32)
            zf = sl(gxf) + jnp.dot(h, whh_f, preferred_element_type=jnp.float32)
            zo = sl(gxo) + jnp.dot(h, whh_o, preferred_element_type=jnp.float32)
            zg = sl(gxg) + jnp.dot(h, whh_g, preferred_element_type=jnp.float32)
            i = jax.nn.sigmoid(zi)
            f = jax.nn.sigmoid(zf)
            o = jax.nn.sigmoid(zo)
            g = jnp.tanh(zg)
            c = f * c + i * g
            return o * jnp.tanh(c), c

        h, c = lax.fori_loop(
            0, seq_len, step,
            (jnp.zeros((BB, H), jnp.float32), jnp.zeros((BB, H), jnp.float32)),
            unroll=2)

    # TODO(synk): nn.Dropout in the classifier is identity at inference time.
    out_ref[...] = out_b + jnp.dot(h, wcls_f,
                                   preferred_element_type=jnp.float32)


def prepare_params(params):
    """One-time preprocessing (NOT per call): transpose weights, reorder gates
    [i,f,g,o] -> [i,f,o,g], fuse b_ih + b_hh, pack both directions' input
    projections into one (in, 8H) matrix, and pack all remaining small
    parameters into a single lane-padded (rows, 128k) slab."""
    H = params["b_ih_f"].shape[0] // 4
    out_size = params["b_cls"].shape[0]

    def reorder_rows(w):
        i, f, g, o = jnp.split(w, 4, axis=0)
        return jnp.concatenate([i, f, o, g], axis=0)

    def reorder_vec(b):
        i, f, g, o = jnp.split(b, 4)
        return jnp.concatenate([i, f, o, g])

    wih_f = reorder_rows(params["w_ih_f"]).T                  # (in, 4H)
    wih_b = reorder_rows(params["w_ih_b"]).T                  # (in, 4H)
    wih = jnp.concatenate([wih_f, wih_b], axis=1).astype(jnp.float32)  # (in, 8H)

    bias = jnp.concatenate([
        reorder_vec(params["b_ih_f"] + params["b_hh_f"]),
        reorder_vec(params["b_ih_b"] + params["b_hh_b"]),
    ])[None, :]                                               # (1, 8H)

    whh = reorder_rows(params["w_hh_f"]).T                    # (H, 4H)
    wcls = params["w_cls"]                                    # (out, 2H)
    wcls_fb = jnp.concatenate([wcls[:, :H].T, wcls[:, H:].T], axis=1)  # (H, 2*out)
    b_cls = params["b_cls"][None, :]                          # (1, out)

    # ---- pack small operands into one slab with 8-aligned row regions ------
    h_pad = -(-H // 8) * 8
    width = -(-max(8 * H, 2 * out_size) // 128) * 128
    r_bias, r_bcls = 0, 1
    r_whh = 8
    r_wcls = r_whh + h_pad
    rows = r_wcls + h_pad

    def put(slab, r, block):
        bh, bw = block.shape
        return slab.at[r:r + bh, :bw].set(block.astype(jnp.float32))

    slab = jnp.zeros((rows, width), jnp.float32)
    slab = put(slab, r_bias, bias)
    slab = put(slab, r_bcls, b_cls)
    slab = put(slab, r_whh, whh)
    slab = put(slab, r_wcls, wcls_fb)

    return {
        "wih": wih,                                           # (in, 8H)
        "slab": slab,                                         # (rows, width)
        "layout": dict(H=H, out=out_size, r_bias=r_bias, r_bcls=r_bcls,
                       r_whh=r_whh, r_wcls=r_wcls),
    }


def motion_model_forward(x, packed, *, block_batch=8):
    """x: (batch, seq_len, in_size) float32; returns (batch, out_size)."""
    B, T, in_size = x.shape
    lay = packed["layout"]
    H, out_size = lay["H"], lay["out"]
    assert B % block_batch == 0, "batch must be a multiple of block_batch"
    BB = block_batch
    nb = B // BB

    # Time-major-within-block layout: row inside a block = t*BB + b_local, so
    # the per-step gate fetch in the kernel is an aligned sublane slab.
    xb = (x.astype(jnp.float32)
           .reshape(nb, BB, T, in_size)
           .transpose(0, 2, 1, 3)
           .reshape(nb, T * BB, in_size))

    kernel = functools.partial(
        _motion_kernel, seq_len=T, block_batch=BB, H=H, out=out_size,
        r_bias=lay["r_bias"], r_bcls=lay["r_bcls"],
        r_whh=lay["r_whh"], r_wcls=lay["r_wcls"])

    return pl.pallas_call(
        kernel,
        out_shape=jax.ShapeDtypeStruct((B, out_size), jnp.float32),
        grid=(nb,),
        in_specs=[
            pl.BlockSpec((1, T * BB, in_size), lambda n: (n, 0, 0)),
            pl.BlockSpec(packed["wih"].shape, lambda n: (0, 0)),   # VMEM-resident
            pl.BlockSpec(packed["slab"].shape, lambda n: (0, 0)),  # VMEM-resident
        ],
        out_specs=pl.BlockSpec((BB, out_size), lambda n: (n, 0)),
        compiler_params=pltpu.CompilerParams(
            dimension_semantics=("parallel",)),                    # v7x: 2 TCs
    )(xb, packed["wih"], packed["slab"])


def reference_forward(x_seq, params):
    """Pure-JAX single-sequence reference matching torch.nn.LSTM(bidirectional)
    + Linear in eval mode."""
    H = params["b_ih_f"].shape[0] // 4

    def cell(carry, x_t, wih, whh, bih, bhh):
        h, c = carry
        gates = x_t @ wih.T + h @ whh.T + bih + bhh
        i, f, g, o = jnp.split(gates, 4)
        i = jax.nn.sigmoid(i)
        f = jax.nn.sigmoid(f)
        g = jnp.tanh(g)
        o = jax.nn.sigmoid(o)
        c = f * c + i * g
        h = o * jnp.tanh(c)
        return (h, c), h

    def run(xs, wih, whh, bih, bhh):
        init = (jnp.zeros((H,), jnp.float32), jnp.zeros((H,), jnp.float32))
        _, hs = lax.scan(lambda ca, xt: cell(ca, xt, wih, whh, bih, bhh),
                         init, xs)
        return hs

    h_f = run(x_seq, params["w_ih_f"], params["w_hh_f"],
              params["b_ih_f"], params["b_hh_f"])
    h_b = run(x_seq[::-1], params["w_ih_b"], params["w_hh_b"],
              params["b_ih_b"], params["b_hh_b"])[::-1]
    last = jnp.concatenate([h_f[-1], h_b[-1]])
    return last @ params["w_cls"].T + params["b_cls"]


def init_params(key, in_size, hidden, out_size):
    """Deterministic synthetic weights (shapes match nn.LSTM / nn.Linear)."""
    H = hidden // 2  # bidirectional -> rnn_hidden = hidden // 2
    ks = jax.random.split(key, 10)
    u = lambda k, shape, s: jax.random.uniform(k, shape, jnp.float32, -s, s)
    s = 1.0 / jnp.sqrt(H)
    sc = 1.0 / jnp.sqrt(hidden)
    return {
        "w_ih_f": u(ks[0], (4 * H, in_size), s),
        "w_hh_f": u(ks[1], (4 * H, H), s),
        "b_ih_f": u(ks[2], (4 * H,), s),
        "b_hh_f": u(ks[3], (4 * H,), s),
        "w_ih_b": u(ks[4], (4 * H, in_size), s),
        "w_hh_b": u(ks[5], (4 * H, H), s),
        "b_ih_b": u(ks[6], (4 * H,), s),
        "b_hh_b": u(ks[7], (4 * H,), s),
        "w_cls": u(ks[8], (out_size, hidden), sc),
        "b_cls": u(ks[9], (out_size,), sc),
    }


if __name__ == "__main__":
    seq_len, in_size, hidden, out_size = 8, 4, 32, 8
    batch, block_batch = 16, 8            # grid of 2 parallel batch blocks

    key = jax.random.PRNGKey(0)
    k_x, k_p = jax.random.split(key)
    x = jax.random.normal(k_x, (batch, seq_len, in_size), jnp.float32)
    params = init_params(k_p, in_size, hidden, out_size)

    # One-time parameter packing (not part of the per-call path).
    packed = prepare_params(params)
    jax.block_until_ready((packed["wih"], packed["slab"]))

    out = motion_model_forward(x, packed, block_batch=block_batch)
    out = jax.block_until_ready(out)

    ref = jax.vmap(lambda xs: reference_forward(xs, params))(x)
    if not jnp.allclose(out, ref, rtol=1e-4, atol=1e-4):
        err = float(jnp.max(jnp.abs(out - ref)))
        raise AssertionError(f"mismatch: max abs err {err}")

    print("KERNEL_OK")
</pallas_src>

<mosaic_0001>
module attributes {stable_mosaic.version = 11 : i64} {
  func.func @_motion_kernel(%arg0: i32, %arg1: memref<1x64x4xf32, #tpu.memory_space<vmem>>, %arg2: memref<4x128xf32, #tpu.memory_space<vmem>>, %arg3: memref<40x128xf32, #tpu.memory_space<vmem>>, %arg4: memref<8x8xf32, #tpu.memory_space<vmem>>) attributes {dimension_semantics = [#tpu.dimension_semantics<parallel>], iteration_bounds = array<i64: 2>, scalar_prefetch = 0 : i64, scratch_operands = 0 : i64, tpu.core_type = #tpu.core_type<tc>, window_params = [{transform_indices = @transform_0, window_bounds = array<i64: 1, 64, 4>}, {pipeline_mode = #tpu.pipeline_mode<synchronous>, transform_indices = @transform_1, window_bounds = array<i64: 4, 128>}, {pipeline_mode = #tpu.pipeline_mode<synchronous>, transform_indices = @transform_2, window_bounds = array<i64: 40, 128>}, {transform_indices = @transform_3, window_bounds = array<i64: 8, 8>}]} {
    %c0 = arith.constant 0 : index
    %c0_0 = arith.constant 0 : index
    %0 = vector.load %arg3[%c0, %c0_0] : memref<40x128xf32, #tpu.memory_space<vmem>>, vector<1x128xf32>
    %c1 = arith.constant 1 : index
    %c0_1 = arith.constant 0 : index
    %1 = vector.load %arg3[%c1, %c0_1] : memref<40x128xf32, #tpu.memory_space<vmem>>, vector<1x8xf32>
    %c8 = arith.constant 8 : index
    %c0_2 = arith.constant 0 : index
    %2 = vector.load %arg3[%c8, %c0_2] : memref<40x128xf32, #tpu.memory_space<vmem>>, vector<16x16xf32>
    %c8_3 = arith.constant 8 : index
    %c16 = arith.constant 16 : index
    %3 = vector.load %arg3[%c8_3, %c16] : memref<40x128xf32, #tpu.memory_space<vmem>>, vector<16x16xf32>
    %c8_4 = arith.constant 8 : index
    %c32 = arith.constant 32 : index
    %4 = vector.load %arg3[%c8_4, %c32] : memref<40x128xf32, #tpu.memory_space<vmem>>, vector<16x16xf32>
    %c8_5 = arith.constant 8 : index
    %c48 = arith.constant 48 : index
    %5 = vector.load %arg3[%c8_5, %c48] : memref<40x128xf32, #tpu.memory_space<vmem>>, vector<16x16xf32>
    %c24 = arith.constant 24 : index
    %c0_6 = arith.constant 0 : index
    %6 = vector.load %arg3[%c24, %c0_6] : memref<40x128xf32, #tpu.memory_space<vmem>>, vector<16x8xf32>
    %c24_7 = arith.constant 24 : index
    %c8_8 = arith.constant 8 : index
    %7 = vector.load %arg3[%c24_7, %c8_8] : memref<40x128xf32, #tpu.memory_space<vmem>>, vector<16x8xf32>
    %c0_9 = arith.constant 0 : index
    %c0_10 = arith.constant 0 : index
    %c0_11 = arith.constant 0 : index
    %8 = vector.load %arg1[%c0_9, %c0_10, %c0_11] : memref<1x64x4xf32, #tpu.memory_space<vmem>>, vector<1x64x4xf32>
    %9 = vector.shape_cast %8 : vector<1x64x4xf32> to vector<64x4xf32>
    %c0_12 = arith.constant 0 : index
    %c0_13 = arith.constant 0 : index
    %10 = vector.load %arg2[%c0_12, %c0_13] : memref<4x128xf32, #tpu.memory_space<vmem>>, vector<4x128xf32>
    %cst = arith.constant dense<0.000000e+00> : vector<64x128xf32>
    %11 = tpu.matmul %9, %10, %cst {dimension_numbers = #tpu.dot_dimension_numbers<[1], [0], [0], [1], [0, 0, 1, 1], [], []>} : vector<64x4xf32>, vector<4x128xf32>, vector<64x128xf32> -> vector<64x128xf32>
    %12 = vector.broadcast %0 : vector<1x128xf32> to vector<64x128xf32>
    %13 = arith.addf %11, %12 : vector<64x128xf32>
    %14 = vector.extract_strided_slice %13 {offsets = [0, 0], sizes = [64, 16], strides = [1, 1]} : vector<64x128xf32> to vector<64x16xf32>
    %15 = vector.extract_strided_slice %13 {offsets = [0, 16], sizes = [64, 16], strides = [1, 1]} : vector<64x128xf32> to vector<64x16xf32>
    %16 = vector.extract_strided_slice %13 {offsets = [0, 32], sizes = [64, 16], strides = [1, 1]} : vector<64x128xf32> to vector<64x16xf32>
    %17 = vector.extract_strided_slice %13 {offsets = [0, 48], sizes = [64, 16], strides = [1, 1]} : vector<64x128xf32> to vector<64x16xf32>
    %18 = vector.extract_strided_slice %13 {offsets = [56, 64], sizes = [8, 16], strides = [1, 1]} : vector<64x128xf32> to vector<8x16xf32>
    %19 = arith.negf %18 : vector<8x16xf32>
    %20 = math.exp %19 : vector<8x16xf32>
    %cst_14 = arith.constant 1.000000e+00 : f32
    %21 = vector.broadcast %cst_14 : f32 to vector<8x16xf32>
    %22 = arith.addf %21, %20 : vector<8x16xf32>
    %23 = arith.divf %21, %22 : vector<8x16xf32>
    %24 = vector.extract_strided_slice %13 {offsets = [56, 96], sizes = [8, 16], strides = [1, 1]} : vector<64x128xf32> to vector<8x16xf32>
    %25 = arith.negf %24 : vector<8x16xf32>
    %26 = math.exp %25 : vector<8x16xf32>
    %cst_15 = arith.constant 1.000000e+00 : f32
    %27 = vector.broadcast %cst_15 : f32 to vector<8x16xf32>
    %28 = arith.addf %27, %26 : vector<8x16xf32>
    %29 = arith.divf %27, %28 : vector<8x16xf32>
    %30 = vector.extract_strided_slice %13 {offsets = [56, 112], sizes = [8, 16], strides = [1, 1]} : vector<64x128xf32> to vector<8x16xf32>
    %31 = math.tanh %30 : vector<8x16xf32>
    %32 = arith.mulf %23, %31 : vector<8x16xf32>
    %33 = math.tanh %32 : vector<8x16xf32>
    %34 = arith.mulf %29, %33 : vector<8x16xf32>
    %cst_16 = arith.constant dense<0.000000e+00> : vector<8x8xf32>
    %35 = tpu.matmul %34, %7, %cst_16 {dimension_numbers = #tpu.dot_dimension_numbers<[1], [0], [0], [1], [0, 0, 1, 1], [], []>} : vector<8x16xf32>, vector<16x8xf32>, vector<8x8xf32> -> vector<8x8xf32>
    %36 = vector.broadcast %1 : vector<1x8xf32> to vector<8x8xf32>
    %37 = arith.addf %35, %36 : vector<8x8xf32>
    %38 = vector.extract_strided_slice %14 {offsets = [0, 0], sizes = [8, 16], strides = [1, 1]} : vector<64x16xf32> to vector<8x16xf32>
    %39 = arith.negf %38 : vector<8x16xf32>
    %40 = math.exp %39 : vector<8x16xf32>
    %cst_17 = arith.constant 1.000000e+00 : f32
    %41 = vector.broadcast %cst_17 : f32 to vector<8x16xf32>
    %42 = arith.addf %41, %40 : vector<8x16xf32>
    %43 = arith.divf %41, %42 : vector<8x16xf32>
    %44 = vector.extract_strided_slice %16 {offsets = [0, 0], sizes = [8, 16], strides = [1, 1]} : vector<64x16xf32> to vector<8x16xf32>
    %45 = arith.negf %44 : vector<8x16xf32>
    %46 = math.exp %45 : vector<8x16xf32>
    %cst_18 = arith.constant 1.000000e+00 : f32
    %47 = vector.broadcast %cst_18 : f32 to vector<8x16xf32>
    %48 = arith.addf %47, %46 : vector<8x16xf32>
    %49 = arith.divf %47, %48 : vector<8x16xf32>
    %50 = vector.extract_strided_slice %17 {offsets = [0, 0], sizes = [8, 16], strides = [1, 1]} : vector<64x16xf32> to vector<8x16xf32>
    %51 = math.tanh %50 : vector<8x16xf32>
    %52 = arith.mulf %43, %51 : vector<8x16xf32>
    %53 = math.tanh %52 : vector<8x16xf32>
    %54 = arith.mulf %49, %53 : vector<8x16xf32>
    %55 = vector.extract_strided_slice %14 {offsets = [8, 0], sizes = [8, 16], strides = [1, 1]} : vector<64x16xf32> to vector<8x16xf32>
    %cst_19 = arith.constant dense<0.000000e+00> : vector<8x16xf32>
    %56 = tpu.matmul %54, %2, %cst_19 {dimension_numbers = #tpu.dot_dimension_numbers<[1], [0], [0], [1], [0, 0, 1, 1], [], []>} : vector<8x16xf32>, vector<16x16xf32>, vector<8x16xf32> -> vector<8x16xf32>
    %57 = arith.addf %55, %56 : vector<8x16xf32>
    %58 = vector.extract_strided_slice %15 {offsets = [8, 0], sizes = [8, 16], strides = [1, 1]} : vector<64x16xf32> to vector<8x16xf32>
    %cst_20 = arith.constant dense<0.000000e+00> : vector<8x16xf32>
    %59 = tpu.matmul %54, %3, %cst_20 {dimension_numbers = #tpu.dot_dimension_numbers<[1], [0], [0], [1], [0, 0, 1, 1], [], []>} : vector<8x16xf32>, vector<16x16xf32>, vector<8x16xf32> -> vector<8x16xf32>
    %60 = arith.addf %58, %59 : vector<8x16xf32>
    %61 = vector.extract_strided_slice %16 {offsets = [8, 0], sizes = [8, 16], strides = [1, 1]} : vector<64x16xf32> to vector<8x16xf32>
    %cst_21 = arith.constant dense<0.000000e+00> : vector<8x16xf32>
    %62 = tpu.matmul %54, %4, %cst_21 {dimension_numbers = #tpu.dot_dimension_numbers<[1], [0], [0], [1], [0, 0, 1, 1], [], []>} : vector<8x16xf32>, vector<16x16xf32>, vector<8x16xf32> -> vector<8x16xf32>
    %63 = arith.addf %61, %62 : vector<8x16xf32>
    %64 = vector.extract_strided_slice %17 {offsets = [8, 0], sizes = [8, 16], strides = [1, 1]} : vector<64x16xf32> to vector<8x16xf32>
    %cst_22 = arith.constant dense<0.000000e+00> : vector<8x16xf32>
    %65 = tpu.matmul %54, %5, %cst_22 {dimension_numbers = #tpu.dot_dimension_numbers<[1], [0], [0], [1], [0, 0, 1, 1], [], []>} : vector<8x16xf32>, vector<16x16xf32>, vector<8x16xf32> -> vector<8x16xf32>
    %66 = arith.addf %64, %65 : vector<8x16xf32>
    %67 = arith.negf %57 : vector<8x16xf32>
    %68 = math.exp %67 : vector<8x16xf32>
    %cst_23 = arith.constant 1.000000e+00 : f32
    %69 = vector.broadcast %cst_23 : f32 to vector<8x16xf32>
    %70 = arith.addf %69, %68 : vector<8x16xf32>
    %71 = arith.divf %69, %70 : vector<8x16xf32>
    %72 = arith.negf %60 : vector<8x16xf32>
    %73 = math.exp %72 : vector<8x16xf32>
    %cst_24 = arith.constant 1.000000e+00 : f32
    %74 = vector.broadcast %cst_24 : f32 to vector<8x16xf32>
    %75 = arith.addf %74, %73 : vector<8x16xf32>
    %76 = arith.divf %74, %75 : vector<8x16xf32>
    %77 = arith.negf %63 : vector<8x16xf32>
    %78 = math.exp %77 : vector<8x16xf32>
    %cst_25 = arith.constant 1.000000e+00 : f32
    %79 = vector.broadcast %cst_25 : f32 to vector<8x16xf32>
    %80 = arith.addf %79, %78 : vector<8x16xf32>
    %81 = arith.divf %79, %80 : vector<8x16xf32>
    %82 = math.tanh %66 : vector<8x16xf32>
    %83 = arith.mulf %76, %52 : vector<8x16xf32>
    %84 = arith.mulf %71, %82 : vector<8x16xf32>
    %85 = arith.addf %83, %84 : vector<8x16xf32>
    %86 = math.tanh %85 : vector<8x16xf32>
    %87 = arith.mulf %81, %86 : vector<8x16xf32>
    %88 = vector.extract_strided_slice %14 {offsets = [16, 0], sizes = [8, 16], strides = [1, 1]} : vector<64x16xf32> to vector<8x16xf32>
    %cst_26 = arith.constant dense<0.000000e+00> : vector<8x16xf32>
    %89 = tpu.matmul %87, %2, %cst_26 {dimension_numbers = #tpu.dot_dimension_numbers<[1], [0], [0], [1], [0, 0, 1, 1], [], []>} : vector<8x16xf32>, vector<16x16xf32>, vector<8x16xf32> -> vector<8x16xf32>
    %90 = arith.addf %88, %89 : vector<8x16xf32>
    %91 = vector.extract_strided_slice %15 {offsets = [16, 0], sizes = [8, 16], strides = [1, 1]} : vector<64x16xf32> to vector<8x16xf32>
    %cst_27 = arith.constant dense<0.000000e+00> : vector<8x16xf32>
    %92 = tpu.matmul %87, %3, %cst_27 {dimension_numbers = #tpu.dot_dimension_numbers<[1], [0], [0], [1], [0, 0, 1, 1], [], []>} : vector<8x16xf32>, vector<16x16xf32>, vector<8x16xf32> -> vector<8x16xf32>
    %93 = arith.addf %91, %92 : vector<8x16xf32>
    %94 = vector.extract_strided_slice %16 {offsets = [16, 0], sizes = [8, 16], strides = [1, 1]} : vector<64x16xf32> to vector<8x16xf32>
    %cst_28 = arith.constant dense<0.000000e+00> : vector<8x16xf32>
    %95 = tpu.matmul %87, %4, %cst_28 {dimension_numbers = #tpu.dot_dimension_numbers<[1], [0], [0], [1], [0, 0, 1, 1], [], []>} : vector<8x16xf32>, vector<16x16xf32>, vector<8x16xf32> -> vector<8x16xf32>
    %96 = arith.addf %94, %95 : vector<8x16xf32>
    %97 = vector.extract_strided_slice %17 {offsets = [16, 0], sizes = [8, 16], strides = [1, 1]} : vector<64x16xf32> to vector<8x16xf32>
    %cst_29 = arith.constant dense<0.000000e+00> : vector<8x16xf32>
    %98 = tpu.matmul %87, %5, %cst_29 {dimension_numbers = #tpu.dot_dimension_numbers<[1], [0], [0], [1], [0, 0, 1, 1], [], []>} : vector<8x16xf32>, vector<16x16xf32>, vector<8x16xf32> -> vector<8x16xf32>
    %99 = arith.addf %97, %98 : vector<8x16xf32>
    %100 = arith.negf %90 : vector<8x16xf32>
    %101 = math.exp %100 : vector<8x16xf32>
    %cst_30 = arith.constant 1.000000e+00 : f32
    %102 = vector.broadcast %cst_30 : f32 to vector<8x16xf32>
    %103 = arith.addf %102, %101 : vector<8x16xf32>
    %104 = arith.divf %102, %103 : vector<8x16xf32>
    %105 = arith.negf %93 : vector<8x16xf32>
    %106 = math.exp %105 : vector<8x16xf32>
    %cst_31 = arith.constant 1.000000e+00 : f32
    %107 = vector.broadcast %cst_31 : f32 to vector<8x16xf32>
    %108 = arith.addf %107, %106 : vector<8x16xf32>
    %109 = arith.divf %107, %108 : vector<8x16xf32>
    %110 = arith.negf %96 : vector<8x16xf32>
    %111 = math.exp %110 : vector<8x16xf32>
    %cst_32 = arith.constant 1.000000e+00 : f32
    %112 = vector.broadcast %cst_32 : f32 to vector<8x16xf32>
    %113 = arith.addf %112, %111 : vector<8x16xf32>
    %114 = arith.divf %112, %113 : vector<8x16xf32>
    %115 = math.tanh %99 : vector<8x16xf32>
    %116 = arith.mulf %109, %85 : vector<8x16xf32>
    %117 = arith.mulf %104, %115 : vector<8x16xf32>
    %118 = arith.addf %116, %117 : vector<8x16xf32>
    %119 = math.tanh %118 : vector<8x16xf32>
    %120 = arith.mulf %114, %119 : vector<8x16xf32>
    %121 = vector.extract_strided_slice %14 {offsets = [24, 0], sizes = [8, 16], strides = [1, 1]} : vector<64x16xf32> to vector<8x16xf32>
    %cst_33 = arith.constant dense<0.000000e+00> : vector<8x16xf32>
    %122 = tpu.matmul %120, %2, %cst_33 {dimension_numbers = #tpu.dot_dimension_numbers<[1], [0], [0], [1], [0, 0, 1, 1], [], []>} : vector<8x16xf32>, vector<16x16xf32>, vector<8x16xf32> -> vector<8x16xf32>
    %123 = arith.addf %121, %122 : vector<8x16xf32>
    %124 = vector.extract_strided_slice %15 {offsets = [24, 0], sizes = [8, 16], strides = [1, 1]} : vector<64x16xf32> to vector<8x16xf32>
    %cst_34 = arith.constant dense<0.000000e+00> : vector<8x16xf32>
    %125 = tpu.matmul %120, %3, %cst_34 {dimension_numbers = #tpu.dot_dimension_numbers<[1], [0], [0], [1], [0, 0, 1, 1], [], []>} : vector<8x16xf32>, vector<16x16xf32>, vector<8x16xf32> -> vector<8x16xf32>
    %126 = arith.addf %124, %125 : vector<8x16xf32>
    %127 = vector.extract_strided_slice %16 {offsets = [24, 0], sizes = [8, 16], strides = [1, 1]} : vector<64x16xf32> to vector<8x16xf32>
    %cst_35 = arith.constant dense<0.000000e+00> : vector<8x16xf32>
    %128 = tpu.matmul %120, %4, %cst_35 {dimension_numbers = #tpu.dot_dimension_numbers<[1], [0], [0], [1], [0, 0, 1, 1], [], []>} : vector<8x16xf32>, vector<16x16xf32>, vector<8x16xf32> -> vector<8x16xf32>
    %129 = arith.addf %127, %128 : vector<8x16xf32>
    %130 = vector.extract_strided_slice %17 {offsets = [24, 0], sizes = [8, 16], strides = [1, 1]} : vector<64x16xf32> to vector<8x16xf32>
    %cst_36 = arith.constant dense<0.000000e+00> : vector<8x16xf32>
    %131 = tpu.matmul %120, %5, %cst_36 {dimension_numbers = #tpu.dot_dimension_numbers<[1], [0], [0], [1], [0, 0, 1, 1], [], []>} : vector<8x16xf32>, vector<16x16xf32>, vector<8x16xf32> -> vector<8x16xf32>
    %132 = arith.addf %130, %131 : vector<8x16xf32>
    %133 = arith.negf %123 : vector<8x16xf32>
    %134 = math.exp %133 : vector<8x16xf32>
    %cst_37 = arith.constant 1.000000e+00 : f32
    %135 = vector.broadcast %cst_37 : f32 to vector<8x16xf32>
    %136 = arith.addf %135, %134 : vector<8x16xf32>
    %137 = arith.divf %135, %136 : vector<8x16xf32>
    %138 = arith.negf %126 : vector<8x16xf32>
    %139 = math.exp %138 : vector<8x16xf32>
    %cst_38 = arith.constant 1.000000e+00 : f32
    %140 = vector.broadcast %cst_38 : f32 to vector<8x16xf32>
    %141 = arith.addf %140, %139 : vector<8x16xf32>
    %142 = arith.divf %140, %141 : vector<8x16xf32>
    %143 = arith.negf %129 : vector<8x16xf32>
    %144 = math.exp %143 : vector<8x16xf32>
    %cst_39 = arith.constant 1.000000e+00 : f32
    %145 = vector.broadcast %cst_39 : f32 to vector<8x16xf32>
    %146 = arith.addf %145, %144 : vector<8x16xf32>
    %147 = arith.divf %145, %146 : vector<8x16xf32>
    %148 = math.tanh %132 : vector<8x16xf32>
    %149 = arith.mulf %142, %118 : vector<8x16xf32>
    %150 = arith.mulf %137, %148 : vector<8x16xf32>
    %151 = arith.addf %149, %150 : vector<8x16xf32>
    %152 = math.tanh %151 : vector<8x16xf32>
    %153 = arith.mulf %147, %152 : vector<8x16xf32>
    %154 = vector.extract_strided_slice %14 {offsets = [32, 0], sizes = [8, 16], strides = [1, 1]} : vector<64x16xf32> to vector<8x16xf32>
    %cst_40 = arith.constant dense<0.000000e+00> : vector<8x16xf32>
    %155 = tpu.matmul %153, %2, %cst_40 {dimension_numbers = #tpu.dot_dimension_numbers<[1], [0], [0], [1], [0, 0, 1, 1], [], []>} : vector<8x16xf32>, vector<16x16xf32>, vector<8x16xf32> -> vector<8x16xf32>
    %156 = arith.addf %154, %155 : vector<8x16xf32>
    %157 = vector.extract_strided_slice %15 {offsets = [32, 0], sizes = [8, 16], strides = [1, 1]} : vector<64x16xf32> to vector<8x16xf32>
    %cst_41 = arith.constant dense<0.000000e+00> : vector<8x16xf32>
    %158 = tpu.matmul %153, %3, %cst_41 {dimension_numbers = #tpu.dot_dimension_numbers<[1], [0], [0], [1], [0, 0, 1, 1], [], []>} : vector<8x16xf32>, vector<16x16xf32>, vector<8x16xf32> -> vector<8x16xf32>
    %159 = arith.addf %157, %158 : vector<8x16xf32>
    %160 = vector.extract_strided_slice %16 {offsets = [32, 0], sizes = [8, 16], strides = [1, 1]} : vector<64x16xf32> to vector<8x16xf32>
    %cst_42 = arith.constant dense<0.000000e+00> : vector<8x16xf32>
    %161 = tpu.matmul %153, %4, %cst_42 {dimension_numbers = #tpu.dot_dimension_numbers<[1], [0], [0], [1], [0, 0, 1, 1], [], []>} : vector<8x16xf32>, vector<16x16xf32>, vector<8x16xf32> -> vector<8x16xf32>
    %162 = arith.addf %160, %161 : vector<8x16xf32>
    %163 = vector.extract_strided_slice %17 {offsets = [32, 0], sizes = [8, 16], strides = [1, 1]} : vector<64x16xf32> to vector<8x16xf32>
    %cst_43 = arith.constant dense<0.000000e+00> : vector<8x16xf32>
    %164 = tpu.matmul %153, %5, %cst_43 {dimension_numbers = #tpu.dot_dimension_numbers<[1], [0], [0], [1], [0, 0, 1, 1], [], []>} : vector<8x16xf32>, vector<16x16xf32>, vector<8x16xf32> -> vector<8x16xf32>
    %165 = arith.addf %163, %164 : vector<8x16xf32>
    %166 = arith.negf %156 : vector<8x16xf32>
    %167 = math.exp %166 : vector<8x16xf32>
    %cst_44 = arith.constant 1.000000e+00 : f32
    %168 = vector.broadcast %cst_44 : f32 to vector<8x16xf32>
    %169 = arith.addf %168, %167 : vector<8x16xf32>
    %170 = arith.divf %168, %169 : vector<8x16xf32>
    %171 = arith.negf %159 : vector<8x16xf32>
    %172 = math.exp %171 : vector<8x16xf32>
    %cst_45 = arith.constant 1.000000e+00 : f32
    %173 = vector.broadcast %cst_45 : f32 to vector<8x16xf32>
    %174 = arith.addf %173, %172 : vector<8x16xf32>
    %175 = arith.divf %173, %174 : vector<8x16xf32>
    %176 = arith.negf %162 : vector<8x16xf32>
    %177 = math.exp %176 : vector<8x16xf32>
    %cst_46 = arith.constant 1.000000e+00 : f32
    %178 = vector.broadcast %cst_46 : f32 to vector<8x16xf32>
    %179 = arith.addf %178, %177 : vector<8x16xf32>
    %180 = arith.divf %178, %179 : vector<8x16xf32>
    %181 = math.tanh %165 : vector<8x16xf32>
    %182 = arith.mulf %175, %151 : vector<8x16xf32>
    %183 = arith.mulf %170, %181 : vector<8x16xf32>
    %184 = arith.addf %182, %183 : vector<8x16xf32>
    %185 = math.tanh %184 : vector<8x16xf32>
    %186 = arith.mulf %180, %185 : vector<8x16xf32>
    %187 = vector.extract_strided_slice %14 {offsets = [40, 0], sizes = [8, 16], strides = [1, 1]} : vector<64x16xf32> to vector<8x16xf32>
    %cst_47 = arith.constant dense<0.000000e+00> : vector<8x16xf32>
    %188 = tpu.matmul %186, %2, %cst_47 {dimension_numbers = #tpu.dot_dimension_numbers<[1], [0], [0], [1], [0, 0, 1, 1], [], []>} : vector<8x16xf32>, vector<16x16xf32>, vector<8x16xf32> -> vector<8x16xf32>
    %189 = arith.addf %187, %188 : vector<8x16xf32>
    %190 = vector.extract_strided_slice %15 {offsets = [40, 0], sizes = [8, 16], strides = [1, 1]} : vector<64x16xf32> to vector<8x16xf32>
    %cst_48 = arith.constant dense<0.000000e+00> : vector<8x16xf32>
    %191 = tpu.matmul %186, %3, %cst_48 {dimension_numbers = #tpu.dot_dimension_numbers<[1], [0], [0], [1], [0, 0, 1, 1], [], []>} : vector<8x16xf32>, vector<16x16xf32>, vector<8x16xf32> -> vector<8x16xf32>
    %192 = arith.addf %190, %191 : vector<8x16xf32>
    %193 = vector.extract_strided_slice %16 {offsets = [40, 0], sizes = [8, 16], strides = [1, 1]} : vector<64x16xf32> to vector<8x16xf32>
    %cst_49 = arith.constant dense<0.000000e+00> : vector<8x16xf32>
    %194 = tpu.matmul %186, %4, %cst_49 {dimension_numbers = #tpu.dot_dimension_numbers<[1], [0], [0], [1], [0, 0, 1, 1], [], []>} : vector<8x16xf32>, vector<16x16xf32>, vector<8x16xf32> -> vector<8x16xf32>
    %195 = arith.addf %193, %194 : vector<8x16xf32>
    %196 = vector.extract_strided_slice %17 {offsets = [40, 0], sizes = [8, 16], strides = [1, 1]} : vector<64x16xf32> to vector<8x16xf32>
    %cst_50 = arith.constant dense<0.000000e+00> : vector<8x16xf32>
    %197 = tpu.matmul %186, %5, %cst_50 {dimension_numbers = #tpu.dot_dimension_numbers<[1], [0], [0], [1], [0, 0, 1, 1], [], []>} : vector<8x16xf32>, vector<16x16xf32>, vector<8x16xf32> -> vector<8x16xf32>
    %198 = arith.addf %196, %197 : vector<8x16xf32>
    %199 = arith.negf %189 : vector<8x16xf32>
    %200 = math.exp %199 : vector<8x16xf32>
    %cst_51 = arith.constant 1.000000e+00 : f32
    %201 = vector.broadcast %cst_51 : f32 to vector<8x16xf32>
    %202 = arith.addf %201, %200 : vector<8x16xf32>
    %203 = arith.divf %201, %202 : vector<8x16xf32>
    %204 = arith.negf %192 : vector<8x16xf32>
    %205 = math.exp %204 : vector<8x16xf32>
    %cst_52 = arith.constant 1.000000e+00 : f32
    %206 = vector.broadcast %cst_52 : f32 to vector<8x16xf32>
    %207 = arith.addf %206, %205 : vector<8x16xf32>
    %208 = arith.divf %206, %207 : vector<8x16xf32>
    %209 = arith.negf %195 : vector<8x16xf32>
    %210 = math.exp %209 : vector<8x16xf32>
    %cst_53 = arith.constant 1.000000e+00 : f32
    %211 = vector.broadcast %cst_53 : f32 to vector<8x16xf32>
    %212 = arith.addf %211, %210 : vector<8x16xf32>
    %213 = arith.divf %211, %212 : vector<8x16xf32>
    %214 = math.tanh %198 : vector<8x16xf32>
    %215 = arith.mulf %208, %184 : vector<8x16xf32>
    %216 = arith.mulf %203, %214 : vector<8x16xf32>
    %217 = arith.addf %215, %216 : vector<8x16xf32>
    %218 = math.tanh %217 : vector<8x16xf32>
    %219 = arith.mulf %213, %218 : vector<8x16xf32>
    %220 = vector.extract_strided_slice %14 {offsets = [48, 0], sizes = [8, 16], strides = [1, 1]} : vector<64x16xf32> to vector<8x16xf32>
    %cst_54 = arith.constant dense<0.000000e+00> : vector<8x16xf32>
    %221 = tpu.matmul %219, %2, %cst_54 {dimension_numbers = #tpu.dot_dimension_numbers<[1], [0], [0], [1], [0, 0, 1, 1], [], []>} : vector<8x16xf32>, vector<16x16xf32>, vector<8x16xf32> -> vector<8x16xf32>
    %222 = arith.addf %220, %221 : vector<8x16xf32>
    %223 = vector.extract_strided_slice %15 {offsets = [48, 0], sizes = [8, 16], strides = [1, 1]} : vector<64x16xf32> to vector<8x16xf32>
    %cst_55 = arith.constant dense<0.000000e+00> : vector<8x16xf32>
    %224 = tpu.matmul %219, %3, %cst_55 {dimension_numbers = #tpu.dot_dimension_numbers<[1], [0], [0], [1], [0, 0, 1, 1], [], []>} : vector<8x16xf32>, vector<16x16xf32>, vector<8x16xf32> -> vector<8x16xf32>
    %225 = arith.addf %223, %224 : vector<8x16xf32>
    %226 = vector.extract_strided_slice %16 {offsets = [48, 0], sizes = [8, 16], strides = [1, 1]} : vector<64x16xf32> to vector<8x16xf32>
    %cst_56 = arith.constant dense<0.000000e+00> : vector<8x16xf32>
    %227 = tpu.matmul %219, %4, %cst_56 {dimension_numbers = #tpu.dot_dimension_numbers<[1], [0], [0], [1], [0, 0, 1, 1], [], []>} : vector<8x16xf32>, vector<16x16xf32>, vector<8x16xf32> -> vector<8x16xf32>
    %228 = arith.addf %226, %227 : vector<8x16xf32>
    %229 = vector.extract_strided_slice %17 {offsets = [48, 0], sizes = [8, 16], strides = [1, 1]} : vector<64x16xf32> to vector<8x16xf32>
    %cst_57 = arith.constant dense<0.000000e+00> : vector<8x16xf32>
    %230 = tpu.matmul %219, %5, %cst_57 {dimension_numbers = #tpu.dot_dimension_numbers<[1], [0], [0], [1], [0, 0, 1, 1], [], []>} : vector<8x16xf32>, vector<16x16xf32>, vector<8x16xf32> -> vector<8x16xf32>
    %231 = arith.addf %229, %230 : vector<8x16xf32>
    %232 = arith.negf %222 : vector<8x16xf32>
    %233 = math.exp %232 : vector<8x16xf32>
    %cst_58 = arith.constant 1.000000e+00 : f32
    %234 = vector.broadcast %cst_58 : f32 to vector<8x16xf32>
    %235 = arith.addf %234, %233 : vector<8x16xf32>
    %236 = arith.divf %234, %235 : vector<8x16xf32>
    %237 = arith.negf %225 : vector<8x16xf32>
    %238 = math.exp %237 : vector<8x16xf32>
    %cst_59 = arith.constant 1.000000e+00 : f32
    %239 = vector.broadcast %cst_59 : f32 to vector<8x16xf32>
    %240 = arith.addf %239, %238 : vector<8x16xf32>
    %241 = arith.divf %239, %240 : vector<8x16xf32>
    %242 = arith.negf %228 : vector<8x16xf32>
    %243 = math.exp %242 : vector<8x16xf32>
    %cst_60 = arith.constant 1.000000e+00 : f32
    %244 = vector.broadcast %cst_60 : f32 to vector<8x16xf32>
    %245 = arith.addf %244, %243 : vector<8x16xf32>
    %246 = arith.divf %244, %245 : vector<8x16xf32>
    %247 = math.tanh %231 : vector<8x16xf32>
    %248 = arith.mulf %241, %217 : vector<8x16xf32>
    %249 = arith.mulf %236, %247 : vector<8x16xf32>
    %250 = arith.addf %248, %249 : vector<8x16xf32>
    %251 = math.tanh %250 : vector<8x16xf32>
    %252 = arith.mulf %246, %251 : vector<8x16xf32>
    %253 = vector.extract_strided_slice %14 {offsets = [56, 0], sizes = [8, 16], strides = [1, 1]} : vector<64x16xf32> to vector<8x16xf32>
    %cst_61 = arith.constant dense<0.000000e+00> : vector<8x16xf32>
    %254 = tpu.matmul %252, %2, %cst_61 {dimension_numbers = #tpu.dot_dimension_numbers<[1], [0], [0], [1], [0, 0, 1, 1], [], []>} : vector<8x16xf32>, vector<16x16xf32>, vector<8x16xf32> -> vector<8x16xf32>
    %255 = arith.addf %253, %254 : vector<8x16xf32>
    %256 = vector.extract_strided_slice %15 {offsets = [56, 0], sizes = [8, 16], strides = [1, 1]} : vector<64x16xf32> to vector<8x16xf32>
    %cst_62 = arith.constant dense<0.000000e+00> : vector<8x16xf32>
    %257 = tpu.matmul %252, %3, %cst_62 {dimension_numbers = #tpu.dot_dimension_numbers<[1], [0], [0], [1], [0, 0, 1, 1], [], []>} : vector<8x16xf32>, vector<16x16xf32>, vector<8x16xf32> -> vector<8x16xf32>
    %258 = arith.addf %256, %257 : vector<8x16xf32>
    %259 = vector.extract_strided_slice %16 {offsets = [56, 0], sizes = [8, 16], strides = [1, 1]} : vector<64x16xf32> to vector<8x16xf32>
    %cst_63 = arith.constant dense<0.000000e+00> : vector<8x16xf32>
    %260 = tpu.matmul %252, %4, %cst_63 {dimension_numbers = #tpu.dot_dimension_numbers<[1], [0], [0], [1], [0, 0, 1, 1], [], []>} : vector<8x16xf32>, vector<16x16xf32>, vector<8x16xf32> -> vector<8x16xf32>
    %261 = arith.addf %259, %260 : vector<8x16xf32>
    %262 = vector.extract_strided_slice %17 {offsets = [56, 0], sizes = [8, 16], strides = [1, 1]} : vector<64x16xf32> to vector<8x16xf32>
    %cst_64 = arith.constant dense<0.000000e+00> : vector<8x16xf32>
    %263 = tpu.matmul %252, %5, %cst_64 {dimension_numbers = #tpu.dot_dimension_numbers<[1], [0], [0], [1], [0, 0, 1, 1], [], []>} : vector<8x16xf32>, vector<16x16xf32>, vector<8x16xf32> -> vector<8x16xf32>
    %264 = arith.addf %262, %263 : vector<8x16xf32>
    %265 = arith.negf %255 : vector<8x16xf32>
    %266 = math.exp %265 : vector<8x16xf32>
    %cst_65 = arith.constant 1.000000e+00 : f32
    %267 = vector.broadcast %cst_65 : f32 to vector<8x16xf32>
    %268 = arith.addf %267, %266 : vector<8x16xf32>
    %269 = arith.divf %267, %268 : vector<8x16xf32>
    %270 = arith.negf %258 : vector<8x16xf32>
    %271 = math.exp %270 : vector<8x16xf32>
    %cst_66 = arith.constant 1.000000e+00 : f32
    %272 = vector.broadcast %cst_66 : f32 to vector<8x16xf32>
    %273 = arith.addf %272, %271 : vector<8x16xf32>
    %274 = arith.divf %272, %273 : vector<8x16xf32>
    %275 = arith.negf %261 : vector<8x16xf32>
    %276 = math.exp %275 : vector<8x16xf32>
    %cst_67 = arith.constant 1.000000e+00 : f32
    %277 = vector.broadcast %cst_67 : f32 to vector<8x16xf32>
    %278 = arith.addf %277, %276 : vector<8x16xf32>
    %279 = arith.divf %277, %278 : vector<8x16xf32>
    %280 = math.tanh %264 : vector<8x16xf32>
    %281 = arith.mulf %274, %250 : vector<8x16xf32>
    %282 = arith.mulf %269, %280 : vector<8x16xf32>
    %283 = arith.addf %281, %282 : vector<8x16xf32>
    %284 = math.tanh %283 : vector<8x16xf32>
    %285 = arith.mulf %279, %284 : vector<8x16xf32>
    %cst_68 = arith.constant dense<0.000000e+00> : vector<8x8xf32>
    %286 = tpu.matmul %285, %6, %cst_68 {dimension_numbers = #tpu.dot_dimension_numbers<[1], [0], [0], [1], [0, 0, 1, 1], [], []>} : vector<8x16xf32>, vector<16x8xf32>, vector<8x8xf32> -> vector<8x8xf32>
    %287 = arith.addf %37, %286 : vector<8x8xf32>
    %c0_69 = arith.constant 0 : index
    %c0_70 = arith.constant 0 : index
    %288 = vector.load %arg4[%c0_69, %c0_70] : memref<8x8xf32, #tpu.memory_space<vmem>>, vector<8x8xf32>
    tpu.vector_store %arg4[%c0_69, %c0_70], %287 {strides = array<i32>} : memref<8x8xf32, #tpu.memory_space<vmem>>, vector<8x8xf32>,
    return
  }
  func.func @transform_0(%arg0: i32) -> (i32, i32, i32) {
    %c0_i32 = arith.constant 0 : i32
    %c0_i32_0 = arith.constant 0 : i32
    %c0_i32_1 = arith.constant 0 : i32
    return %arg0, %c0_i32, %c0_i32_0 : i32, i32, i32
  }
  func.func @transform_1(%arg0: i32) -> (i32, i32) {
    %c0_i32 = arith.constant 0 : i32
    %c0_i32_0 = arith.constant 0 : i32
    %c0_i32_1 = arith.constant 0 : i32
    return %c0_i32, %c0_i32_0 : i32, i32
  }
  func.func @transform_2(%arg0: i32) -> (i32, i32) {
    %c0_i32 = arith.constant 0 : i32
    %c0_i32_0 = arith.constant 0 : i32
    %c0_i32_1 = arith.constant 0 : i32
    return %c0_i32, %c0_i32_0 : i32, i32
  }
  func.func @transform_3(%arg0: i32) -> (i32, i32) {
    %c0_i32 = arith.constant 0 : i32
    %c0_i32_0 = arith.constant 0 : i32
    return %arg0, %c0_i32 : i32, i32
  }
}

</mosaic_0001>

<bundles_post_ra>
// kernel: tpu_custom_call.1
= control target key start
LH: loop header
LB: loop body
LE: loop exit
PB: predicated region body
PF: predicated region fallthrough
CT: control target
= control target key end

     0   :  { %s3655_s12 = smov 0   ;;  %s4006_s0 = inlined_call_operand.vmem [shape: f32[2,64,4], index: 0, kind: input, shape index: {}]   ;;  %s4007_s1 = inlined_call_operand.vmem [shape: f32[4,128], index: 1, kind: input, shape index: {}]   ;;  %s4008_s2 = inlined_call_operand.vmem [shape: f32[40,128], index: 2, kind: input, shape index: {}]   ;;  %s4009_s3 = inlined_call_operand.vmem [shape: f32[16,8], index: 3, kind: output, shape index: {}]  }
   0x1 LB: > { %s2960_s13 = sadd.s32 4294967295, %s3623_s12   ;;  %p2964_p0 = scmp.ge.s32.totalorder %s3623_s12, 1  ;;  %s3623_s12 = sphi %s3655_s12, %s13_s12  }
   0x2   : > { %p137_p1 = scmp.lt.s32.totalorder %s3623_s12, 3 }
   0x4   : > { %p138_p2 = pnand %p2964_p0, %p137_p1 }
   0x5   : > { %v183_v0 = vld [vmem:[%s4007_s1] sm:$0xf] (!%p138_p2)  ;;  %vm213_vm0 = vcmask (!%p138_p2), 1043456   ;;  %p160_p3 = scmp.lt.s32.totalorder (!%p138_p2), %s2960_s13, 1  ;;  %vm188_vm1 = vcmask (!%p138_p2), 31744   ;;  %s3625_s22 = smov (!%p138_p2), 80  }
   0x6   : > { %141 = sbr.rel (%p138_p2) target bundleno = 6562 (0x19a2), region = 32  ;;  %3134 = vmatprep.subr.msk.mxu0 (!%p138_p2), %vm213_vm0, %v183_v0  ;;  %v2968_v9 = vld [vmem:[%s4008_s2] ss:$0 sm:$0xff] (!%p138_p2)  ;;  %v3700_v25 = vld [vmem:[%s4008_s2 + $0x8] sm:$0xff] (!%p138_p2)  ;;  %v3705_v26 = vld [vmem:[%s4008_s2 + $0x10] sm:$0xff] (!%p138_p2)  ;;  %s3626_s4 = smov (!%p138_p2), 32  }
   0x7   : > { %3135 = vmatpush3.msk.msra.mxu0 (!%p138_p2), %vm213_vm0, %v183_v0  ;;  %v3469_v28 = vpack.i.bf16 (!%p138_p2), %v3705_v26, %v3700_v25  ;;  %v3720_v40 = vld [vmem:[%s4008_s2 + $0x18] sm:$0xff] (!%p138_p2)  ;;  %v3725_v41 = vld [vmem:[%s4008_s2 + $0x20] sm:$0xff] (!%p138_p2)  ;;  %v3627_v51 = vmov (!%p138_p2), 0.0|0.0   ;;  %vm3628_vm2 = vmmov (!%p138_p2), 0   ;;  %v3629_v52 = vmov (!%p138_p2), 0.0   ;;  %s3630_s5 = smov (!%p138_p2), 96  }
   0x8   : > { %v3446_v42 = vpack.c.bf16 (!%p138_p2), %v3725_v41, %v3720_v40  ;;  %3370 = vmatprep.subr.bf16.mxu0 (!%p138_p2), %v3627_v51  ;;  %3358 = vmatprep.subr.bf16.mxu1 (!%p138_p2), %v3627_v51  ;;  %v3474_v56 = vpack.i.bf16 (!%p138_p2), %v3725_v41, %v3720_v40  ;;  %s3631_s6 = smov (!%p138_p2), 120   ;;  %s3632_s7 = smov (!%p138_p2), 112   ;;  %vm355_vm3 = vcmask (!%p138_p2), 130048   ;;  %vm2905_vm4 = vcmask (!%p138_p2), 64512  }
   0x9   : > { %3152 = vmatprep.mubr.msk.f32.mxu1 (!%p138_p2), %vm3628_vm2, %v3629_v52  ;;  %s3633_s8 = smov (!%p138_p2), 48   ;;  %s3634_s9 = smov (!%p138_p2), 16  }
   0xd   : > { %s4011_s13 = smov (!%p160_p3, %s2960_s13), 1 }
   0xe   : > { %s3034_s16 = sshll.u32 %s4011_s13, 6  ;;  %s2967_s10 = sshll.u32 %s4011_s13, 3 }
   0xf   : > { %s164_s19 = scalar_lea.vmem %s4006_s0, %s3034_s16  ;;  %s168_s17 = scalar_lea.vmem %s4009_s3, %s2967_s10 }
  0x10   : > { %v175_v1 = vld [vmem:[%s164_s19] sm:$0xff]  ;;  %v176_v2 = vld [vmem:[%s164_s19 + $0x8] sm:$0xff]  ;;  %v177_v3 = vld [vmem:[%s164_s19 + $0x10] sm:$0xff] }
  0x11   : > { %3136 = vmatprep.mubr.msk.f32.mxu0 %vm188_vm1, %v175_v1  ;;  %v178_v4 = vld [vmem:[%s164_s19 + $0x18] sm:$0xff]  ;;  %v179_v5 = vld [vmem:[%s164_s19 + $0x20] sm:$0xff]  ;;  %v180_v6 = vld [vmem:[%s164_s19 + $0x28] sm:$0xff]  ;;  %v3751_v1 = vpack.c.bf16 %v3705_v26, %v3700_v25 }
  0x12   : > { %3137 = vmatmul.mubr.msk.f32.vlgmr.msra.gmra.mrb[0].mxu0 %vm188_vm1, %v176_v2  ;;  %v181_v7 = vld [vmem:[%s164_s19 + $0x30] sm:$0xff]  ;;  %v182_v8 = vld [vmem:[%s164_s19 + $0x38] sm:$0xff] }
  0x13   : > { %3139 = vmatprep.mubr.msk.f32.mxu0 %vm188_vm1, %v177_v3 }
  0x16   : > { %3140 = vmatmul.mubr.msk.f32.gmra.mrb[2].mxu0 %vm188_vm1, %v178_v4 }
  0x17   : > { %3142 = vmatprep.mubr.msk.f32.mxu0 %vm188_vm1, %v179_v5 }
  0x1a   : > { %3143 = vmatmul.mubr.msk.f32.gmra.mrb[4].mxu0 %vm188_vm1, %v180_v6 }
  0x1b   : > { %3145 = vmatprep.mubr.msk.f32.mxu0 %vm188_vm1, %v181_v7 }
  0x1e   : > { %3146 = vmatmul.mubr.msk.f32.gmra.mrb[6].mxu0 %vm188_vm1, %v182_v8 }
  0x1f   : > { %3180 = vmatprep.mubr.msk.f32.mxu0 %vm3628_vm2, %v3629_v52 }
  0xe5   : > { %v3138_v10 = vpop.f32.mrb[0].mxu0 }
  0xe6   : > { %v3683_v11 = vadd.f32 %v3138_v10, %v2968_v9  ;;  %v283_v12 = vpop.f32.mrb[1].mxu0 }
  0xe7   : > { %v284_v13 = vadd.f32 %v2968_v9, %v283_v12 }
  0xe9   : > { %3489 = vtanh.f32 %v284_v13  ;;  %v3141_v14 = vpop.f32.mrb[2].mxu0  ;;  %v2981_v31 = vmul.f32 -1.442695, %v284_v13 }
  0xea   : > { %v3685_v15 = vadd.f32 %v3141_v14, %v2968_v9  ;;  %v293_v16 = vpop.f32.mrb[3].mxu0 }
  0xeb   : > { %v3687_v17 = vadd.f32 %v2968_v9, %v293_v16 }
  0xed   : > { %v3144_v18 = vpop.f32.mrb[4].mxu0 }
  0xee   : > { %v3689_v19 = vadd.f32 %v3144_v18, %v2968_v9  ;;  %v303_v20 = vpop.f32.mrb[5].mxu0 }
  0xef   : > { %v3691_v21 = vadd.f32 %v2968_v9, %v303_v20 }
  0xf1   : > { %v3147_v22 = vpop.f32.mrb[6].mxu0 }
  0xf2   : > { %v3693_v23 = vadd.f32 %v3147_v22, %v2968_v9  ;;  %v313_v29 = vpop.f32.mrb[7].mxu0 }
  0xf3   : > { %v3490_v24 = vpop.eup %3489  ;;  %v3710_v30 = vadd.f32 %v2968_v9, %v313_v29 }
  0xf4   : > { %436 = vrot.lane.b32.xlu0 %v3490_v24, %s3625_s22  ;;  %3491 = vtanh.f32 %v3693_v23  ;;  %v2978_v32 = vmul.f32 -1.442695, %v3693_v23 }
  0xf5   : > { %3493 = vpow2.f32 %v2981_v31 }
  0xf6   : > { %3495 = vpow2.f32 %v2978_v32 }
  0xfe   : > { %v3492_v27 = vpop.eup %3491 }
  0xff   : > { %330 = vrot.lane.b32.xlu1 %v3492_v27, %s3625_s22  ;;  %v3494_v33 = vpop.eup %3493 }
 0x100   : > { %v431_v34 = vadd.f32 1.0, %v3494_v33  ;;  %v3496_v35 = vpop.eup %3495 }
 0x101   : > { %v325_v36 = vadd.f32 1.0, %v3496_v35 }
 0x102   : > { %3497 = vrcp.f32 %v431_v34 }
 0x103   : > { %3470 = vrot.lane.b32.xlu1 %v3469_v28, %s3625_s22  ;;  %3499 = vrcp.f32 %v325_v36 }
 0x10c   : > { %v3498_v37 = vpop.eup %3497 }
 0x10d   : > { %v3500_v43 = vpop.eup %3499 }
 0x166   : > { %v437_v38 = vpop.permute.xlu0 %436 }
 0x167   : > { %v3714_v39 = vmul.f32 %v3498_v37, %v437_v38 }
 0x169   : > { %3501 = vtanh.f32 %v3714_v39 }
 0x171   : > { %v331_v44 = vpop.permute.xlu1 %330 }
 0x172   : > { %v333_v45 = vmul.f32 %v3500_v43, %v331_v44 }
 0x173   : > { %v3502_v46 = vpop.eup %3501 }
 0x174   : > { %3503 = vtanh.f32 %v333_v45  ;;  %442 = vrot.lane.b32.xlu0 %v3502_v46, %s3626_s4 }
 0x175   : > { %v3471_v47 = vpop.permute.xlu1 %3470 }
 0x176   : > { %v3473_v48 = vunpack.i.h.bf16 %v3471_v47  ;;  %v3472_v49 = vunpack.i.l.bf16 %v3471_v47 }
 0x178   : > { %v3730_v50 = vpack.c.bf16 %v3473_v48, %v3472_v49 }
 0x17a   : > { %3372 = vmatpush3.bf16.msra.mxu0 %v3730_v50 }
 0x17b   : > { %3376 = vmatprep.subr.bf16.mxu0 %v3627_v51 }
 0x17e   : > { %v3504_v53 = vpop.eup %3503 }
 0x17f   : > { %336 = vrot.lane.b32.xlu1 %v3504_v53, %s3626_s4 }
 0x1e6   : > { %v443_v54 = vpop.permute.xlu0 %442 }
 0x1e7   : > { %v445_v55 = vmul.f32 %v3498_v37, %v443_v54 }
 0x1e9   : > { %447 = vrot.lane.b32.xlu0 %v445_v55, %s3630_s5 }
 0x1ed   : > { %3475 = vrot.lane.b32.xlu0 %v3474_v56, %s3631_s6 }
 0x1f1   : > { %v337_v57 = vpop.permute.xlu1 %336  ;;  %3480 = vrot.lane.b32.xlu0 %v3469_v28, %s3632_s7 }
 0x1f2   : > { %v339_v58 = vmul.f32 %v3500_v43, %v337_v57 }
 0x1f4   : > { %345 = vrot.lane.b32.xlu1 %v339_v58, %s3626_s4 }
 0x1f8   : > { %3485 = vrot.lane.b32.xlu1 %v3469_v28, %s3630_s5 }
 0x25b   : > { %v448_v59 = vpop.permute.xlu0 %447 }
 0x25c   : > { %3181 = vmatmul.mubr.msk.f32.vlgmr.msra.gmra.mrb[8].mxu0 %vm355_vm3, %v448_v59 }
 0x25d   : > { %3194 = vmatprep.mubr.msk.f32.mxu0 %vm3628_vm2, %v3629_v52 }
 0x25f   : > { %v3476_v60 = vpop.permute.xlu0 %3475 }
 0x260   : > { %v3478_v61 = vunpack.i.h.bf16 %v3476_v60  ;;  %v3477_v62 = vunpack.i.l.bf16 %v3476_v60 }
 0x262   : > { %v3359_v63 = vpack.c.bf16 %v3478_v61, %v3477_v62 }
 0x263   : > { %v3481_v0 = vpop.permute.xlu0 %3480 }
 0x264   : > { %3360 = vmatpush3.bf16.msra.mxu1 %v3359_v63  ;;  %v3483_v2 = vunpack.i.h.bf16 %v3481_v0  ;;  %v3482_v3 = vunpack.i.l.bf16 %v3481_v0 }
 0x265   : > { %3361 = vmatprep.subr.bf16.mxu1 %v3627_v51 }
 0x266   : > { %v346_v4 = vpop.permute.xlu1 %345  ;;  %v3754_v5 = vpack.c.bf16 %v3483_v2, %v3482_v3 }
 0x267   : > { %3153 = vmatmul.mubr.msk.f32.vlgmr.msra.gmra.mrb[0].mxu1 %vm355_vm3, %v346_v4 }
 0x268   : > { %3363 = vmatpush3.bf16.msra.mxu1 %v3751_v1  ;;  %3159 = vmatprep.mubr.msk.f32.mxu1 %vm3628_vm2, %v3629_v52 }
 0x269   : > { %3364 = vmatprep.subr.bf16.mxu1 %v3627_v51  ;;  %3378 = vmatpush3.bf16.msra.mxu0 %v3754_v5 }
 0x26a   : > { %v3486_v6 = vpop.permute.xlu1 %3485  ;;  %3382 = vmatprep.subr.bf16.mxu0 %v3627_v51 }
 0x26b   : > { %v3488_v7 = vunpack.i.h.bf16 %v3486_v6  ;;  %v3487_v8 = vunpack.i.l.bf16 %v3486_v6  ;;  %3160 = vmatmul.mubr.msk.f32.vlgmr.msra.gmra.mrb[2].mxu1 %vm355_vm3, %v448_v59 }
 0x26c   : > { %3366 = vmatpush3.bf16.msra.mxu1 %v3754_v5  ;;  %3166 = vmatprep.mubr.msk.f32.mxu1 %vm3628_vm2, %v3629_v52 }
 0x26d   : > { %v3767_v9 = vpack.c.bf16 %v3488_v7, %v3487_v8  ;;  %3367 = vmatprep.subr.bf16.mxu1 %v3627_v51 }
 0x26f   : > { %3167 = vmatmul.mubr.msk.f32.vlgmr.msra.gmra.mrb[4].mxu1 %vm355_vm3, %v448_v59 }
 0x270   : > { %3369 = vmatpush3.bf16.msra.mxu1 %v3767_v9  ;;  %3173 = vmatprep.mubr.msk.f32.mxu1 %vm3628_vm2, %v3629_v52 }
 0x271   : > { %3373 = vmatprep.subr.bf16.mxu1 %v3627_v51 }
 0x273   : > { %3174 = vmatmul.mubr.msk.f32.vlgmr.msra.gmra.mrb[6].mxu1 %vm355_vm3, %v448_v59 }
 0x274   : > { %3375 = vmatpush3.bf16.msra.mxu1 %v3751_v1  ;;  %3187 = vmatprep.mubr.msk.f32.mxu1 %vm3628_vm2, %v3629_v52 }
 0x275   : > { %3379 = vmatprep.subr.bf16.mxu1 %v3627_v51 }
 0x32f   : > { %v758_v10 = vpop.f32.mrb[8].mxu0 }
 0x330   : > { %763 = vrot.lane.b32.xlu0 %v758_v10, %s3633_s8  ;;  %v3182_v12 = vpop.f32.mrb[9].mxu0 }
 0x33e   : > { %v517_v13 = vpop.f32.mrb[2].mxu1 }
 0x33f   : > { %v3161_v14 = vpop.f32.mrb[3].mxu1  ;;  %v521_v27 = vadd.f32 %v517_v13, %v3683_v11 }
 0x341   : > { %v2986_v28 = vmul.f32 -1.442695, %v521_v27 }
 0x342   : > { %v596_v16 = vpop.f32.mrb[4].mxu1 }
 0x343   : > { %601 = vrot.lane.b32.xlu0 %v596_v16, %s3634_s9  ;;  %v3168_v18 = vpop.f32.mrb[5].mxu1 }
 0x346   : > { %v677_v20 = vpop.f32.mrb[6].mxu1 }
 0x347   : > { %v3175_v22 = vpop.f32.mrb[7].mxu1 }
 0x3a2   : > { %v764_v24 = vpop.permute.xlu0 %763 }
 0x3a3   : > { %v766_v25 = vadd.f32 %v764_v24, %v3683_v11 }
 0x3a5   : > { %3505 = vtanh.f32 %v766_v25 }
 0x3a6   : > { %3507 = vpow2.f32 %v2986_v28 }
 0x3af   : > { %v3506_v26 = vpop.eup %3505 }
 0x3b0   : > { %792 = vrot.lane.b32.xlu1 %v3506_v26, %s3625_s22  ;;  %v3508_v29 = vpop.eup %3507 }
 0x3b1   : > { %v770_v31 = vadd.f32 1.0, %v3508_v29 }
 0x3b3   : > { %3509 = vrcp.f32 %v770_v31 }
 0x3b4   : > { %787 = vrot.lane.b32.xlu1 %v3714_v39, %s3634_s9 }
 0x3b5   : > { %v602_v35 = vpop.permute.xlu0 %601 }
 0x3b6   : > { %v604_v36 = vadd.f32 %v602_v35, %v3683_v11 }
 0x3b8   : > { %682 = vrot.lane.b32.xlu1 %v677_v20, %s3626_s4  ;;  %v2987_v37 = vmul.f32 -1.442695, %v604_v36 }
 0x3ba   : > { %3511 = vpow2.f32 %v2987_v37 }
 0x3bd   : > { %v3510_v32 = vpop.eup %3509 }
 0x3c4   : > { %v3512_v38 = vpop.eup %3511 }
 0x3c5   : > { %v776_v39 = vadd.f32 1.0, %v3512_v38 }
 0x3c7   : > { %3513 = vrcp.f32 %v776_v39 }
 0x3d1   : > { %v3514_v44 = vpop.eup %3513 }
 0x422   : > { %v793_v33 = vpop.permute.xlu1 %792 }
 0x423   : > { %v795_v34 = vmul.f32 %v3510_v32, %v793_v33 }
 0x425   : > { %797 = vrot.lane.b32.xlu0 %v795_v34, %s3634_s9 }
 0x426   : > { %v788_v43 = vpop.permute.xlu1 %787 }
 0x427   : > { %v790_v45 = vmul.f32 %v3514_v44, %v788_v43 }
 0x42a   : > { %v683_v49 = vpop.permute.xlu1 %682 }
 0x42b   : > { %v685_v53 = vadd.f32 %v683_v49, %v3683_v11 }
 0x42d   : > { %v2988_v54 = vmul.f32 -1.442695, %v685_v53 }
 0x497   : > { %v798_v46 = vpop.permute.xlu0 %797 }
 0x498   : > { %v3790_v47 = vadd.f32 %v798_v46, %v790_v45 }
 0x49a   : > { %3515 = vtanh.f32 %v3790_v47 }
 0x49b   : > { %3517 = vpow2.f32 %v2988_v54 }
 0x4a4   : > { %v3516_v48 = vpop.eup %3515 }
 0x4a5   : > { %803 = vrot.lane.b32.xlu0 %v3516_v48, %s3634_s9  ;;  %v3518_v55 = vpop.eup %3517 }
 0x4a6   : > { %v782_v56 = vadd.f32 1.0, %v3518_v55 }
 0x4a8   : > { %3519 = vrcp.f32 %v782_v56 }
 0x4b2   : > { %v3520_v57 = vpop.eup %3519 }
 0x517   : > { %v804_v58 = vpop.permute.xlu0 %803 }
 0x518   : > { %v806_v59 = vmul.f32 %v3520_v57, %v804_v58 }
 0x51a   : > { %808 = vrot.lane.b32.xlu1 %v806_v59, %s3630_s5 }
 0x58c   : > { %v809_v60 = vpop.permute.xlu1 %808 }
 0x58d   : > { %3188 = vmatmul.mubr.msk.f32.vlgmr.msra.gmra.mrb[8].mxu1 %vm355_vm3, %v809_v60  ;;  %3195 = vmatmul.mubr.msk.f32.vlgmr.msra.gmra.mrb[10].mxu0 %vm355_vm3, %v809_v60 }
 0x58e   : > { %3381 = vmatpush3.bf16.msra.mxu1 %v3767_v9  ;;  %3384 = vmatpush3.bf16.msra.mxu0 %v3730_v50 }
 0x58f   : > { %3201 = vmatprep.mubr.msk.f32.mxu1 %vm3628_vm2, %v3629_v52  ;;  %3208 = vmatprep.mubr.msk.f32.mxu0 %vm3628_vm2, %v3629_v52 }
 0x590   : > { %3388 = vmatprep.subr.bf16.mxu0 %v3627_v51  ;;  %3385 = vmatprep.subr.bf16.mxu1 %v3627_v51 }
 0x591   : > { %3202 = vmatmul.mubr.msk.f32.vlgmr.msra.gmra.mrb[10].mxu1 %vm355_vm3, %v809_v60  ;;  %3209 = vmatmul.mubr.msk.f32.vlgmr.msra.gmra.mrb[12].mxu0 %vm355_vm3, %v809_v60 }
 0x592   : > { %3390 = vmatpush3.bf16.msra.mxu0 %v3754_v5  ;;  %3387 = vmatpush3.bf16.msra.mxu1 %v3751_v1 }
 0x593   : > { %3215 = vmatprep.mubr.msk.f32.mxu1 %vm3628_vm2, %v3629_v52  ;;  %3222 = vmatprep.mubr.msk.f32.mxu0 %vm3628_vm2, %v3629_v52 }
 0x594   : > { %3391 = vmatprep.subr.bf16.mxu1 %v3627_v51  ;;  %3394 = vmatprep.subr.bf16.mxu0 %v3627_v51 }
 0x660   : > { %v878_v11 = vpop.f32.mrb[8].mxu1  ;;  %v949_v61 = vpop.f32.mrb[10].mxu0 }
 0x661   : > { %v3189_v62 = vpop.f32.mrb[9].mxu1  ;;  %v3196_v63 = vpop.f32.mrb[11].mxu0  ;;  %v882_v10 = vadd.f32 %v878_v11, %v3687_v17 }
 0x663   : > { %v2993_v12 = vmul.f32 -1.442695, %v882_v10 }
 0x664   : > { %v1024_v0 = vpop.f32.mrb[10].mxu1  ;;  %v1099_v2 = vpop.f32.mrb[12].mxu0 }
 0x665   : > { %1104 = vrot.lane.b32.xlu0 %v1099_v2, %s3633_s8  ;;  %v3203_v3 = vpop.f32.mrb[11].mxu1  ;;  %v3210_v4 = vpop.f32.mrb[13].mxu0 }
 0x669   : > { %954 = vrot.lane.b32.xlu0 %v949_v61, %s3634_s9 }
 0x66d   : > { %1029 = vrot.lane.b32.xlu0 %v1024_v0, %s3626_s4 }
 0x6d7   : > { %v1105_v6 = vpop.permute.xlu0 %1104 }
 0x6d8   : > { %v1107_v7 = vadd.f32 %v1105_v6, %v3687_v17 }
 0x6da   : > { %3521 = vtanh.f32 %v1107_v7 }
 0x6db   : > { %3523 = vpow2.f32 %v2993_v12  ;;  %v955_v22 = vpop.permute.xlu0 %954 }
 0x6dc   : > { %v957_v24 = vadd.f32 %v955_v22, %v3687_v17 }
 0x6de   : > { %v2994_v25 = vmul.f32 -1.442695, %v957_v24 }
 0x6df   : > { %v1030_v34 = vpop.permute.xlu0 %1029 }
 0x6e0   : > { %v1032_v35 = vadd.f32 %v1030_v34, %v3687_v17 }
 0x6e2   : > { %v2995_v36 = vmul.f32 -1.442695, %v1032_v35 }
 0x6e4   : > { %v3522_v8 = vpop.eup %3521 }
 0x6e5   : > { %1129 = vrot.lane.b32.xlu1 %v3522_v8, %s3625_s22  ;;  %v3524_v13 = vpop.eup %3523 }
 0x6e6   : > { %v1111_v14 = vadd.f32 1.0, %v3524_v13 }
 0x6e8   : > { %3525 = vrcp.f32 %v1111_v14 }
 0x6e9   : > { %3527 = vpow2.f32 %v2994_v25 }
 0x6f2   : > { %v3526_v16 = vpop.eup %3525 }
 0x6f3   : > { %v3528_v26 = vpop.eup %3527 }
 0x6f4   : > { %v1117_v27 = vadd.f32 1.0, %v3528_v26 }
 0x6f6   : > { %3529 = vrcp.f32 %v1117_v27 }
 0x700   : > { %v3530_v28 = vpop.eup %3529 }
 0x701   : > { %v1127_v29 = vmul.f32 %v3530_v28, %v3790_v47 }
 0x757   : > { %v1130_v18 = vpop.permute.xlu1 %1129 }
 0x758   : > { %v1132_v20 = vmul.f32 %v3526_v16, %v1130_v18 }
 0x75a   : > { %1134 = vrot.lane.b32.xlu1 %v1132_v20, %s3634_s9 }
 0x7cc   : > { %v1135_v31 = vpop.permute.xlu1 %1134 }
 0x7cd   : > { %v3825_v32 = vadd.f32 %v1135_v31, %v1127_v29 }
 0x7cf   : > { %3531 = vtanh.f32 %v3825_v32 }
 0x7d0   : > { %3533 = vpow2.f32 %v2995_v36 }
 0x7d9   : > { %v3532_v33 = vpop.eup %3531 }
 0x7da   : > { %1140 = vrot.lane.b32.xlu1 %v3532_v33, %s3634_s9  ;;  %v3534_v37 = vpop.eup %3533 }
 0x7db   : > { %v1123_v38 = vadd.f32 1.0, %v3534_v37 }
 0x7dd   : > { %3535 = vrcp.f32 %v1123_v38 }
 0x7e7   : > { %v3536_v39 = vpop.eup %3535 }
 0x84c   : > { %v1141_v43 = vpop.permute.xlu1 %1140 }
 0x84d   : > { %v1143_v44 = vmul.f32 %v3536_v39, %v1141_v43 }
 0x84f   : > { %1145 = vrot.lane.b32.xlu0 %v1143_v44, %s3630_s5 }
 0x8c1   : > { %v1146_v45 = vpop.permute.xlu0 %1145 }
 0x8c2   : > { %3216 = vmatmul.mubr.msk.f32.vlgmr.msra.gmra.mrb[12].mxu1 %vm355_vm3, %v1146_v45  ;;  %3223 = vmatmul.mubr.msk.f32.vlgmr.msra.gmra.mrb[14].mxu0 %vm355_vm3, %v1146_v45 }
 0x8c3   : > { %3393 = vmatpush3.bf16.msra.mxu1 %v3767_v9  ;;  %3396 = vmatpush3.bf16.msra.mxu0 %v3730_v50 }
 0x8c4   : > { %3229 = vmatprep.mubr.msk.f32.mxu1 %vm3628_vm2, %v3629_v52  ;;  %3236 = vmatprep.mubr.msk.f32.mxu0 %vm3628_vm2, %v3629_v52 }
 0x8c5   : > { %3400 = vmatprep.subr.bf16.mxu0 %v3627_v51  ;;  %3397 = vmatprep.subr.bf16.mxu1 %v3627_v51 }
 0x8c6   : > { %3230 = vmatmul.mubr.msk.f32.vlgmr.msra.gmra.mrb[14].mxu1 %vm355_vm3, %v1146_v45  ;;  %3237 = vmatmul.mubr.msk.f32.vlgmr.msra.gmra.mrb[16].mxu0 %vm355_vm3, %v1146_v45 }
 0x8c7   : > { %3402 = vmatpush3.bf16.msra.mxu0 %v3754_v5  ;;  %3399 = vmatpush3.bf16.msra.mxu1 %v3751_v1 }
 0x8c8   : > { %3243 = vmatprep.mubr.msk.f32.mxu1 %vm3628_vm2, %v3629_v52  ;;  %3250 = vmatprep.mubr.msk.f32.mxu0 %vm3628_vm2, %v3629_v52 }
 0x8c9   : > { %3403 = vmatprep.subr.bf16.mxu1 %v3627_v51  ;;  %3406 = vmatprep.subr.bf16.mxu0 %v3627_v51 }
 0x995   : > { %v1215_v17 = vpop.f32.mrb[12].mxu1  ;;  %v1286_v46 = vpop.f32.mrb[14].mxu0 }
 0x996   : > { %v3217_v47 = vpop.f32.mrb[13].mxu1  ;;  %v3224_v48 = vpop.f32.mrb[15].mxu0  ;;  %v1219_v59 = vadd.f32 %v1215_v17, %v3685_v15 }
 0x998   : > { %v3000_v60 = vmul.f32 -1.442695, %v1219_v59 }
 0x999   : > { %v1361_v49 = vpop.f32.mrb[14].mxu1  ;;  %v1436_v53 = vpop.f32.mrb[16].mxu0 }
 0x99a   : > { %1441 = vrot.lane.b32.xlu1 %v1436_v53, %s3633_s8  ;;  %v3231_v54 = vpop.f32.mrb[15].mxu1  ;;  %v3238_v55 = vpop.f32.mrb[17].mxu0 }
 0x99e   : > { %1291 = vrot.lane.b32.xlu1 %v1286_v46, %s3634_s9 }
 0x9a2   : > { %1366 = vrot.lane.b32.xlu1 %v1361_v49, %s3626_s4 }
 0xa0c   : > { %v1442_v56 = vpop.permute.xlu1 %1441 }
 0xa0d   : > { %v1444_v57 = vadd.f32 %v1442_v56, %v3685_v15 }
 0xa0f   : > { %3537 = vtanh.f32 %v1444_v57 }
 0xa10   : > { %3539 = vpow2.f32 %v3000_v60  ;;  %v1292_v2 = vpop.permute.xlu1 %1291 }
 0xa11   : > { %v1294_v3 = vadd.f32 %v1292_v2, %v3685_v15 }
 0xa13   : > { %v3001_v4 = vmul.f32 -1.442695, %v1294_v3 }
 0xa14   : > { %v1367_v16 = vpop.permute.xlu1 %1366 }
 0xa15   : > { %v1369_v18 = vadd.f32 %v1367_v16, %v3685_v15 }
 0xa17   : > { %v3002_v20 = vmul.f32 -1.442695, %v1369_v18 }
 0xa19   : > { %v3538_v58 = vpop.eup %3537 }
 0xa1a   : > { %1466 = vrot.lane.b32.xlu0 %v3538_v58, %s3625_s22  ;;  %v3540_v11 = vpop.eup %3539 }
 0xa1b   : > { %v1448_v61 = vadd.f32 1.0, %v3540_v11 }
 0xa1d   : > { %3541 = vrcp.f32 %v1448_v61 }
 0xa1e   : > { %3543 = vpow2.f32 %v3001_v4 }
 0xa27   : > { %v3542_v62 = vpop.eup %3541 }
 0xa28   : > { %v3544_v6 = vpop.eup %3543 }
 0xa29   : > { %v1454_v7 = vadd.f32 1.0, %v3544_v6 }
 0xa2b   : > { %3545 = vrcp.f32 %v1454_v7 }
 0xa35   : > { %v3546_v8 = vpop.eup %3545 }
 0xa36   : > { %v1464_v10 = vmul.f32 %v3546_v8, %v3825_v32 }
 0xa8c   : > { %v1467_v63 = vpop.permute.xlu0 %1466 }
 0xa8d   : > { %v1469_v0 = vmul.f32 %v3542_v62, %v1467_v63 }
 0xa8f   : > { %1471 = vrot.lane.b32.xlu0 %v1469_v0, %s3634_s9 }
 0xb01   : > { %v1472_v12 = vpop.permute.xlu0 %1471 }
 0xb02   : > { %v3860_v13 = vadd.f32 %v1472_v12, %v1464_v10 }
 0xb04   : > { %3547 = vtanh.f32 %v3860_v13 }
 0xb05   : > { %3549 = vpow2.f32 %v3002_v20 }
 0xb0e   : > { %v3548_v14 = vpop.eup %3547 }
 0xb0f   : > { %1477 = vrot.lane.b32.xlu0 %v3548_v14, %s3634_s9  ;;  %v3550_v22 = vpop.eup %3549 }
 0xb10   : > { %v1460_v24 = vadd.f32 1.0, %v3550_v22 }
 0xb12   : > { %3551 = vrcp.f32 %v1460_v24 }
 0xb1c   : > { %v3552_v25 = vpop.eup %3551 }
 0xb81   : > { %v1478_v26 = vpop.permute.xlu0 %1477 }
 0xb82   : > { %v1480_v27 = vmul.f32 %v3552_v25, %v1478_v26 }
 0xb84   : > { %1482 = vrot.lane.b32.xlu1 %v1480_v27, %s3630_s5 }
 0xbf6   : > { %v1483_v28 = vpop.permute.xlu1 %1482 }
 0xbf7   : > { %3244 = vmatmul.mubr.msk.f32.vlgmr.msra.gmra.mrb[16].mxu1 %vm355_vm3, %v1483_v28  ;;  %3251 = vmatmul.mubr.msk.f32.vlgmr.msra.gmra.mrb[18].mxu0 %vm355_vm3, %v1483_v28 }
 0xbf8   : > { %3405 = vmatpush3.bf16.msra.mxu1 %v3767_v9  ;;  %3408 = vmatpush3.bf16.msra.mxu0 %v3730_v50 }
 0xbf9   : > { %3257 = vmatprep.mubr.msk.f32.mxu1 %vm3628_vm2, %v3629_v52  ;;  %3264 = vmatprep.mubr.msk.f32.mxu0 %vm3628_vm2, %v3629_v52 }
 0xbfa   : > { %3412 = vmatprep.subr.bf16.mxu0 %v3627_v51  ;;  %3409 = vmatprep.subr.bf16.mxu1 %v3627_v51 }
 0xbfb   : > { %3258 = vmatmul.mubr.msk.f32.vlgmr.msra.gmra.mrb[18].mxu1 %vm355_vm3, %v1483_v28  ;;  %3265 = vmatmul.mubr.msk.f32.vlgmr.msra.gmra.mrb[20].mxu0 %vm355_vm3, %v1483_v28 }
 0xbfc   : > { %3414 = vmatpush3.bf16.msra.mxu0 %v3754_v5  ;;  %3411 = vmatpush3.bf16.msra.mxu1 %v3751_v1 }
 0xbfd   : > { %3271 = vmatprep.mubr.msk.f32.mxu1 %vm3628_vm2, %v3629_v52  ;;  %3278 = vmatprep.mubr.msk.f32.mxu0 %vm3628_vm2, %v3629_v52 }
 0xbfe   : > { %3415 = vmatprep.subr.bf16.mxu1 %v3627_v51  ;;  %3418 = vmatprep.subr.bf16.mxu0 %v3627_v51 }
 0xcca   : > { %v1552_v15 = vpop.f32.mrb[16].mxu1  ;;  %v1623_v29 = vpop.f32.mrb[18].mxu0 }
 0xccb   : > { %v3245_v31 = vpop.f32.mrb[17].mxu1  ;;  %v3252_v32 = vpop.f32.mrb[19].mxu0  ;;  %v1556_v43 = vadd.f32 %v1552_v15, %v3691_v21 }
 0xccd   : > { %v3007_v44 = vmul.f32 -1.442695, %v1556_v43 }
 0xcce   : > { %v1698_v33 = vpop.f32.mrb[18].mxu1  ;;  %v1773_v34 = vpop.f32.mrb[20].mxu0 }
 0xccf   : > { %1778 = vrot.lane.b32.xlu0 %v1773_v34, %s3633_s8  ;;  %v3259_v35 = vpop.f32.mrb[19].mxu1  ;;  %v3266_v36 = vpop.f32.mrb[21].mxu0 }
 0xcd3   : > { %1628 = vrot.lane.b32.xlu0 %v1623_v29, %s3634_s9 }
 0xcd7   : > { %1703 = vrot.lane.b32.xlu0 %v1698_v33, %s3626_s4 }
 0xd41   : > { %v1779_v37 = vpop.permute.xlu0 %1778 }
 0xd42   : > { %v1781_v38 = vadd.f32 %v1779_v37, %v3691_v21 }
 0xd44   : > { %3553 = vtanh.f32 %v1781_v38 }
 0xd45   : > { %3555 = vpow2.f32 %v3007_v44  ;;  %v1629_v49 = vpop.permute.xlu0 %1628 }
 0xd46   : > { %v1631_v53 = vadd.f32 %v1629_v49, %v3691_v21 }
 0xd48   : > { %v3008_v54 = vmul.f32 -1.442695, %v1631_v53 }
 0xd49   : > { %v1704_v61 = vpop.permute.xlu0 %1703 }
 0xd4a   : > { %v1706_v62 = vadd.f32 %v1704_v61, %v3691_v21 }
 0xd4c   : > { %v3009_v63 = vmul.f32 -1.442695, %v1706_v62 }
 0xd4e   : > { %v3554_v39 = vpop.eup %3553 }
 0xd4f   : > { %1803 = vrot.lane.b32.xlu1 %v3554_v39, %s3625_s22  ;;  %v3556_v45 = vpop.eup %3555 }
 0xd50   : > { %v1785_v17 = vadd.f32 1.0, %v3556_v45 }
 0xd52   : > { %3557 = vrcp.f32 %v1785_v17 }
 0xd53   : > { %3559 = vpow2.f32 %v3008_v54 }
 0xd5c   : > { %v3558_v46 = vpop.eup %3557 }
 0xd5d   : > { %v3560_v55 = vpop.eup %3559 }
 0xd5e   : > { %v1791_v56 = vadd.f32 1.0, %v3560_v55 }
 0xd60   : > { %3561 = vrcp.f32 %v1791_v56 }
 0xd6a   : > { %v3562_v57 = vpop.eup %3561 }
 0xd6b   : > { %v1801_v58 = vmul.f32 %v3562_v57, %v3860_v13 }
 0xdc1   : > { %v1804_v47 = vpop.permute.xlu1 %1803 }
 0xdc2   : > { %v1806_v48 = vmul.f32 %v3558_v46, %v1804_v47 }
 0xdc4   : > { %1808 = vrot.lane.b32.xlu1 %v1806_v48, %s3634_s9 }
 0xe36   : > { %v1809_v59 = vpop.permute.xlu1 %1808 }
 0xe37   : > { %v3895_v60 = vadd.f32 %v1809_v59, %v1801_v58 }
 0xe39   : > { %3563 = vtanh.f32 %v3895_v60 }
 0xe3a   : > { %3565 = vpow2.f32 %v3009_v63 }
 0xe43   : > { %v3564_v11 = vpop.eup %3563 }
 0xe44   : > { %1814 = vrot.lane.b32.xlu1 %v3564_v11, %s3634_s9  ;;  %v3566_v0 = vpop.eup %3565 }
 0xe45   : > { %v1797_v2 = vadd.f32 1.0, %v3566_v0 }
 0xe47   : > { %3567 = vrcp.f32 %v1797_v2 }
 0xe51   : > { %v3568_v3 = vpop.eup %3567 }
 0xeb6   : > { %v1815_v4 = vpop.permute.xlu1 %1814 }
 0xeb7   : > { %v1817_v6 = vmul.f32 %v3568_v3, %v1815_v4 }
 0xeb9   : > { %1819 = vrot.lane.b32.xlu0 %v1817_v6, %s3630_s5 }
 0xf2b   : > { %v1820_v7 = vpop.permute.xlu0 %1819 }
 0xf2c   : > { %3272 = vmatmul.mubr.msk.f32.vlgmr.msra.gmra.mrb[20].mxu1 %vm355_vm3, %v1820_v7  ;;  %3279 = vmatmul.mubr.msk.f32.vlgmr.msra.gmra.mrb[22].mxu0 %vm355_vm3, %v1820_v7 }
 0xf2d   : > { %3417 = vmatpush3.bf16.msra.mxu1 %v3767_v9  ;;  %3420 = vmatpush3.bf16.msra.mxu0 %v3730_v50 }
 0xf2e   : > { %3285 = vmatprep.mubr.msk.f32.mxu1 %vm3628_vm2, %v3629_v52  ;;  %3292 = vmatprep.mubr.msk.f32.mxu0 %vm3628_vm2, %v3629_v52 }
 0xf2f   : > { %3424 = vmatprep.subr.bf16.mxu0 %v3627_v51  ;;  %3421 = vmatprep.subr.bf16.mxu1 %v3627_v51 }
 0xf30   : > { %3286 = vmatmul.mubr.msk.f32.vlgmr.msra.gmra.mrb[22].mxu1 %vm355_vm3, %v1820_v7  ;;  %3293 = vmatmul.mubr.msk.f32.vlgmr.msra.gmra.mrb[24].mxu0 %vm355_vm3, %v1820_v7 }
 0xf31   : > { %3426 = vmatpush3.bf16.msra.mxu0 %v3754_v5  ;;  %3423 = vmatpush3.bf16.msra.mxu1 %v3751_v1 }
 0xf32   : > { %3299 = vmatprep.mubr.msk.f32.mxu1 %vm3628_vm2, %v3629_v52  ;;  %3306 = vmatprep.mubr.msk.f32.mxu0 %vm3628_vm2, %v3629_v52 }
 0xf33   : > { %3427 = vmatprep.subr.bf16.mxu1 %v3627_v51  ;;  %3430 = vmatprep.subr.bf16.mxu0 %v3627_v51 }
 0xfff   : > { %v1889_v21 = vpop.f32.mrb[20].mxu1  ;;  %v1960_v8 = vpop.f32.mrb[22].mxu0 }
0x1000   : > { %v3273_v10 = vpop.f32.mrb[21].mxu1  ;;  %v3280_v12 = vpop.f32.mrb[23].mxu0  ;;  %v1893_v25 = vadd.f32 %v1889_v21, %v3689_v19 }
0x1002   : > { %v3014_v26 = vmul.f32 -1.442695, %v1893_v25 }
0x1003   : > { %v2035_v13 = vpop.f32.mrb[22].mxu1  ;;  %v2110_v14 = vpop.f32.mrb[24].mxu0 }
0x1004   : > { %2115 = vrot.lane.b32.xlu1 %v2110_v14, %s3633_s8  ;;  %v3287_v16 = vpop.f32.mrb[23].mxu1  ;;  %v3294_v18 = vpop.f32.mrb[25].mxu0 }
0x1008   : > { %1965 = vrot.lane.b32.xlu1 %v1960_v8, %s3634_s9 }
0x100c   : > { %2040 = vrot.lane.b32.xlu1 %v2035_v13, %s3626_s4 }
0x1076   : > { %v2116_v20 = vpop.permute.xlu1 %2115 }
0x1077   : > { %v2118_v22 = vadd.f32 %v2116_v20, %v3689_v19 }
0x1079   : > { %3569 = vtanh.f32 %v2118_v22 }
0x107a   : > { %3571 = vpow2.f32 %v3014_v26  ;;  %v1966_v32 = vpop.permute.xlu1 %1965 }
0x107b   : > { %v1968_v33 = vadd.f32 %v1966_v32, %v3689_v19 }
0x107d   : > { %v3015_v34 = vmul.f32 -1.442695, %v1968_v33 }
0x107e   : > { %v2041_v45 = vpop.permute.xlu1 %2040 }
0x107f   : > { %v2043_v17 = vadd.f32 %v2041_v45, %v3689_v19 }
0x1081   : > { %v3016_v46 = vmul.f32 -1.442695, %v2043_v17 }
0x1083   : > { %v3570_v24 = vpop.eup %3569 }
0x1084   : > { %2140 = vrot.lane.b32.xlu0 %v3570_v24, %s3625_s22  ;;  %v3572_v27 = vpop.eup %3571 }
0x1085   : > { %v2122_v28 = vadd.f32 1.0, %v3572_v27 }
0x1087   : > { %3573 = vrcp.f32 %v2122_v28 }
0x1088   : > { %3575 = vpow2.f32 %v3015_v34 }
0x1091   : > { %v3574_v15 = vpop.eup %3573 }
0x1092   : > { %v3576_v35 = vpop.eup %3575 }
0x1093   : > { %v2128_v36 = vadd.f32 1.0, %v3576_v35 }
0x1095   : > { %3577 = vrcp.f32 %v2128_v36 }
0x109f   : > { %v3578_v37 = vpop.eup %3577 }
0x10a0   : > { %v2138_v38 = vmul.f32 %v3578_v37, %v3895_v60 }
0x10f6   : > { %v2141_v29 = vpop.permute.xlu0 %2140 }
0x10f7   : > { %v2143_v31 = vmul.f32 %v3574_v15, %v2141_v29 }
0x10f9   : > { %2145 = vrot.lane.b32.xlu0 %v2143_v31, %s3634_s9 }
0x116b   : > { %v2146_v39 = vpop.permute.xlu0 %2145 }
0x116c   : > { %v3930_v43 = vadd.f32 %v2146_v39, %v2138_v38 }
0x116e   : > { %3579 = vtanh.f32 %v3930_v43 }
0x116f   : > { %3581 = vpow2.f32 %v3016_v46 }
0x1178   : > { %v3580_v44 = vpop.eup %3579 }
0x1179   : > { %2151 = vrot.lane.b32.xlu0 %v3580_v44, %s3634_s9  ;;  %v3582_v47 = vpop.eup %3581 }
0x117a   : > { %v2134_v48 = vadd.f32 1.0, %v3582_v47 }
0x117c   : > { %3583 = vrcp.f32 %v2134_v48 }
0x1186   : > { %v3584_v49 = vpop.eup %3583 }
0x11eb   : > { %v2152_v53 = vpop.permute.xlu0 %2151 }
0x11ec   : > { %v2154_v54 = vmul.f32 %v3584_v49, %v2152_v53 }
0x11ee   : > { %2156 = vrot.lane.b32.xlu1 %v2154_v54, %s3630_s5 }
0x1260   : > { %v2157_v55 = vpop.permute.xlu1 %2156 }
0x1261   : > { %3300 = vmatmul.mubr.msk.f32.vlgmr.msra.gmra.mrb[24].mxu1 %vm355_vm3, %v2157_v55  ;;  %3307 = vmatmul.mubr.msk.f32.vlgmr.msra.gmra.mrb[26].mxu0 %vm355_vm3, %v2157_v55 }
0x1262   : > { %3429 = vmatpush3.bf16.msra.mxu1 %v3767_v9  ;;  %3432 = vmatpush3.bf16.msra.mxu0 %v3730_v50 }
0x1263   : > { %3313 = vmatprep.mubr.msk.f32.mxu1 %vm3628_vm2, %v3629_v52  ;;  %3320 = vmatprep.mubr.msk.f32.mxu0 %vm3628_vm2, %v3629_v52 }
0x1264   : > { %3436 = vmatprep.subr.bf16.mxu0 %v3627_v51  ;;  %3433 = vmatprep.subr.bf16.mxu1 %v3627_v51 }
0x1265   : > { %3314 = vmatmul.mubr.msk.f32.vlgmr.msra.gmra.mrb[26].mxu1 %vm355_vm3, %v2157_v55  ;;  %3321 = vmatmul.mubr.msk.f32.vlgmr.msra.gmra.mrb[28].mxu0 %vm355_vm3, %v2157_v55 }
0x1266   : > { %3438 = vmatpush3.bf16.msra.mxu0 %v3754_v5  ;;  %3435 = vmatpush3.bf16.msra.mxu1 %v3751_v1 }
0x1267   : > { %3327 = vmatprep.mubr.msk.f32.mxu1 %vm3628_vm2, %v3629_v52  ;;  %3334 = vmatprep.mubr.msk.f32.mxu0 %vm3628_vm2, %v3629_v52 }
0x1268   : > { %3439 = vmatprep.subr.bf16.mxu1 %v3627_v51  ;;  %3442 = vmatprep.subr.bf16.mxu0 %v3627_v51 }
0x1334   : > { %v2226_v19 = vpop.f32.mrb[24].mxu1  ;;  %v2297_v56 = vpop.f32.mrb[26].mxu0 }
0x1335   : > { %v3301_v57 = vpop.f32.mrb[25].mxu1  ;;  %v3308_v58 = vpop.f32.mrb[27].mxu0  ;;  %v2230_v63 = vadd.f32 %v2226_v19, %v3710_v30 }
0x1337   : > { %v3021_v0 = vmul.f32 -1.442695, %v2230_v63  ;;  %v2979_v63 = vld [vmem:[%s4008_s2 + $0x1] ss:$0 sm:$0xff] }
0x1338   : > { %v2372_v59 = vpop.f32.mrb[26].mxu1  ;;  %v2447_v60 = vpop.f32.mrb[28].mxu0 }
0x1339   : > { %2452 = vrot.lane.b32.xlu0 %v2447_v60, %s3633_s8  ;;  %v3315_v5 = vpop.f32.mrb[27].mxu1  ;;  %v3322_v1 = vpop.f32.mrb[29].mxu0 }
0x133d   : > { %2302 = vrot.lane.b32.xlu0 %v2297_v56, %s3634_s9 }
0x1341   : > { %2377 = vrot.lane.b32.xlu0 %v2372_v59, %s3626_s4 }
0x13ab   : > { %v2453_v11 = vpop.permute.xlu0 %2452 }
0x13ac   : > { %v2455_v61 = vadd.f32 %v2453_v11, %v3710_v30 }
0x13ae   : > { %3585 = vtanh.f32 %v2455_v61 }
0x13af   : > { %3587 = vpow2.f32 %v3021_v0  ;;  %v2303_v21 = vpop.permute.xlu0 %2302 }
0x13b0   : > { %v2305_v8 = vadd.f32 %v2303_v21, %v3710_v30 }
0x13b2   : > { %v3022_v10 = vmul.f32 -1.442695, %v2305_v8 }
0x13b3   : > { %v2378_v24 = vpop.permute.xlu0 %2377 }
0x13b4   : > { %v2380_v25 = vadd.f32 %v2378_v24, %v3710_v30 }
0x13b6   : > { %v3023_v26 = vmul.f32 -1.442695, %v2380_v25 }
0x13b8   : > { %v3586_v62 = vpop.eup %3585 }
0x13b9   : > { %2477 = vrot.lane.b32.xlu1 %v3586_v62, %s3625_s22  ;;  %v3588_v2 = vpop.eup %3587 }
0x13ba   : > { %v2459_v3 = vadd.f32 1.0, %v3588_v2 }
0x13bc   : > { %3589 = vrcp.f32 %v2459_v3 }
0x13bd   : > { %3591 = vpow2.f32 %v3022_v10 }
0x13c6   : > { %v3590_v4 = vpop.eup %3589 }
0x13c7   : > { %v3592_v12 = vpop.eup %3591 }
0x13c8   : > { %v2465_v13 = vadd.f32 1.0, %v3592_v12 }
0x13ca   : > { %3593 = vrcp.f32 %v2465_v13 }
0x13d4   : > { %v3594_v14 = vpop.eup %3593 }
0x13d5   : > { %v2475_v16 = vmul.f32 %v3594_v14, %v3930_v43 }
0x142b   : > { %v2478_v6 = vpop.permute.xlu1 %2477 }
0x142c   : > { %v2480_v7 = vmul.f32 %v3590_v4, %v2478_v6 }
0x142e   : > { %2482 = vrot.lane.b32.xlu1 %v2480_v7, %s3634_s9 }
0x14a0   : > { %v2483_v18 = vpop.permute.xlu1 %2482 }
0x14a1   : > { %v2485_v20 = vadd.f32 %v2483_v18, %v2475_v16 }
0x14a3   : > { %3595 = vtanh.f32 %v2485_v20 }
0x14a4   : > { %3597 = vpow2.f32 %v3023_v26 }
0x14ad   : > { %v3596_v22 = vpop.eup %3595 }
0x14ae   : > { %2488 = vrot.lane.b32.xlu1 %v3596_v22, %s3634_s9  ;;  %v3598_v27 = vpop.eup %3597 }
0x14af   : > { %v2471_v28 = vadd.f32 1.0, %v3598_v27 }
0x14b1   : > { %3599 = vrcp.f32 %v2471_v28 }
0x14bb   : > { %v3600_v15 = vpop.eup %3599 }
0x1520   : > { %v2489_v29 = vpop.permute.xlu1 %2488 }
0x1521   : > { %v2491_v31 = vmul.f32 %v3600_v15, %v2489_v29 }
0x1523   : > { %2493 = vrot.lane.b32.xlu0 %v2491_v31, %s3630_s5 }
0x1595   : > { %v2494_v32 = vpop.permute.xlu0 %2493 }
0x1596   : > { %3328 = vmatmul.mubr.msk.f32.vlgmr.msra.gmra.mrb[28].mxu1 %vm355_vm3, %v2494_v32  ;;  %3335 = vmatmul.mubr.msk.f32.vlgmr.msra.gmra.mrb[30].mxu0 %vm355_vm3, %v2494_v32 }
0x1597   : > { %3441 = vmatpush3.bf16.msra.mxu1 %v3767_v9  ;;  %3444 = vmatpush3.bf16.msra.mxu0 %v3730_v50 }
0x1598   : > { %3341 = vmatprep.mubr.msk.f32.mxu1 %vm3628_vm2, %v3629_v52  ;;  %3348 = vmatprep.mubr.msk.f32.mxu0 %vm3628_vm2, %v3629_v52 }
0x1599   : > { %3445 = vmatprep.subr.bf16.mxu1 %v3627_v51 }
0x159a   : > { %3342 = vmatmul.mubr.msk.f32.vlgmr.msra.gmra.mrb[30].mxu1 %vm355_vm3, %v2494_v32  ;;  %3349 = vmatmul.mubr.msk.f32.vlgmr.msra.gmra.mrb[32].mxu0 %vm355_vm3, %v2494_v32 }
0x159b   : > { %3447 = vmatpush3.bf16.msra.mxu1 %v3446_v42  ;;  %3355 = vmatprep.mubr.msk.f32.mxu1 %vm3628_vm2, %v3629_v52 }
0x1669   : > { %v2563_v30 = vpop.f32.mrb[28].mxu1  ;;  %v2634_v50 = vpop.f32.mrb[30].mxu0 }
0x166a   : > { %v3329_v9 = vpop.f32.mrb[29].mxu1  ;;  %v3336_v33 = vpop.f32.mrb[31].mxu0  ;;  %v2567_v42 = vadd.f32 %v2563_v30, %v3693_v23 }
0x166c   : > { %v3028_v52 = vmul.f32 -1.442695, %v2567_v42 }
0x166d   : > { %v2709_v34 = vpop.f32.mrb[30].mxu1  ;;  %v2784_v35 = vpop.f32.mrb[32].mxu0 }
0x166e   : > { %2789 = vrot.lane.b32.xlu1 %v2784_v35, %s3633_s8  ;;  %v3343_v51 = vpop.f32.mrb[31].mxu1  ;;  %v3350_v36 = vpop.f32.mrb[33].mxu0 }
0x1672   : > { %2639 = vrot.lane.b32.xlu1 %v2634_v50, %s3634_s9 }
0x1676   : > { %2714 = vrot.lane.b32.xlu1 %v2709_v34, %s3626_s4 }
0x16e0   : > { %v2790_v37 = vpop.permute.xlu1 %2789 }
0x16e1   : > { %v2792_v40 = vadd.f32 %v2790_v37, %v3693_v23 }
0x16e3   : > { %3601 = vtanh.f32 %v2792_v40 }
0x16e4   : > { %3603 = vpow2.f32 %v3028_v52  ;;  %v2640_v17 = vpop.permute.xlu1 %2639 }
0x16e5   : > { %v2642_v46 = vadd.f32 %v2640_v17, %v3693_v23 }
0x16e7   : > { %v3029_v47 = vmul.f32 -1.442695, %v2642_v46 }
0x16e8   : > { %v2715_v57 = vpop.permute.xlu1 %2714 }
0x16e9   : > { %v2717_v58 = vadd.f32 %v2715_v57, %v3693_v23 }
0x16eb   : > { %v3030_v59 = vmul.f32 -1.442695, %v2717_v58 }
0x16ed   : > { %v3602_v41 = vpop.eup %3601 }
0x16ee   : > { %2814 = vrot.lane.b32.xlu0 %v3602_v41, %s3625_s22  ;;  %v3604_v38 = vpop.eup %3603 }
0x16ef   : > { %v2796_v39 = vadd.f32 1.0, %v3604_v38 }
0x16f1   : > { %3605 = vrcp.f32 %v2796_v39 }
0x16f2   : > { %3607 = vpow2.f32 %v3029_v47 }
0x16fb   : > { %v3606_v43 = vpop.eup %3605 }
0x16fc   : > { %v3608_v48 = vpop.eup %3607 }
0x16fd   : > { %v2802_v49 = vadd.f32 1.0, %v3608_v48 }
0x16ff   : > { %3609 = vrcp.f32 %v2802_v49 }
0x1709   : > { %v3610_v53 = vpop.eup %3609 }
0x170a   : > { %v2812_v54 = vmul.f32 %v3610_v53, %v2485_v20 }
0x1760   : > { %v2815_v44 = vpop.permute.xlu0 %2814 }
0x1761   : > { %v2817_v45 = vmul.f32 %v3606_v43, %v2815_v44 }
0x1763   : > { %2819 = vrot.lane.b32.xlu0 %v2817_v45, %s3634_s9 }
0x17d5   : > { %v2820_v55 = vpop.permute.xlu0 %2819 }
0x17d6   : > { %v2822_v19 = vadd.f32 %v2820_v55, %v2812_v54 }
0x17d8   : > { %3611 = vtanh.f32 %v2822_v19 }
0x17d9   : > { %3613 = vpow2.f32 %v3030_v59 }
0x17e2   : > { %v3612_v56 = vpop.eup %3611 }
0x17e3   : > { %2825 = vrot.lane.b32.xlu0 %v3612_v56, %s3634_s9  ;;  %v3614_v60 = vpop.eup %3613 }
0x17e4   : > { %v2808_v5 = vadd.f32 1.0, %v3614_v60 }
0x17e6   : > { %3615 = vrcp.f32 %v2808_v5 }
0x17f0   : > { %v3616_v1 = vpop.eup %3615 }
0x1855   : > { %v2826_v11 = vpop.permute.xlu0 %2825 }
0x1856   : > { %v2828_v61 = vmul.f32 %v3616_v1, %v2826_v11 }
0x1858   : > { %2830 = vrot.lane.b32.xlu1 %v2828_v61, %s3630_s5 }
0x18ca   : > { %v2831_v62 = vpop.permute.xlu1 %2830 }
0x18cb   : > { %3356 = vmatmul.mubr.msk.f32.vlgmr.msra.gmra.mrb[0].mxu1 %vm355_vm3, %v2831_v62 }
0x199e   : > { %v2900_v23 = vpop.f32.mrb[0].mxu1 }
0x199f   : > { %v3448_v0 = vadd.f32 %v2979_v63, %v2900_v23  ;;  %v3357_v2 = vpop.f32.mrb[1].mxu1 }
0x19a1   : > { %2906 = vst.msk [vmem:[%s168_s17] sm:$0xff] %vm2905_vm4, %v3448_v0 }
0x19a2 PF: > { %s13_s12 = sadd.s32 1, %s3623_s12  }
0x19a3   : > { %p10_p4 = scmp.ge.s32.totalorder %s13_s12, 4  }
0x19a5   :  { %12 = sbr.rel (!%p10_p4) target bundleno = 1 (0x1), region = 62 }

</bundles_post_ra>
